<compile_context>
chip_gen: v6e
topology: v6e:2x2x1
jax: 0.10.0
libtpu: 0.0.40
codegen_flags: <defaults>
</compile_context>

<pallas_src>
import inspect
from dataclasses import dataclass
from functools import partial
from typing import Any

import jax
import jax.numpy as jnp
from jax.experimental import pallas as pl
from jax.experimental.pallas import tpu as pltpu


# --------------------------------------------------------------------------- #
# helpers
# --------------------------------------------------------------------------- #
def _round_up(x: int, m: int) -> int:
    return (x + m - 1) // m * m


def _cdiv(a: int, b: int) -> int:
    return (a + b - 1) // b


def _vmem_capacity_bytes() -> int:
    try:
        return int(pltpu.get_tpu_info().vmem_capacity_bytes)
    except Exception:
        return 128 << 20  # v5e / v6e default


def _device_kind() -> str:
    try:
        return jax.devices()[0].device_kind.lower()
    except Exception:
        return ""


def _supports_single_buffer() -> bool:
    if not hasattr(pl, "Buffered"):
        return False
    try:
        return "pipeline_mode" in inspect.signature(pl.BlockSpec).parameters
    except (TypeError, ValueError):
        return False


_SINGLE_BUFFER_OK = _supports_single_buffer()


def _spec(shape, index_map, *, single_buffer=False):
    """BlockSpec helper; grid-invariant blocks get a single VMEM buffer."""
    if single_buffer and _SINGLE_BUFFER_OK:
        return pl.BlockSpec(shape, index_map, pipeline_mode=pl.Buffered(1))
    return pl.BlockSpec(shape, index_map)


# --------------------------------------------------------------------------- #
# kernels
# --------------------------------------------------------------------------- #
def _mlp_kernel_single(x_ref, w1_ref, b1_ref, w2_ref, b2_ref, o_ref, *,
                       mxu_dtype, act_dtype, gelu_approximate):
    """Full hidden dim resident (n_h == 1): no accumulator scratch."""
    x = x_ref[...].astype(mxu_dtype)
    h = jnp.dot(x, w1_ref[...], preferred_element_type=jnp.float32)
    h = h.astype(act_dtype) + b1_ref[...].astype(act_dtype)
    h = jax.nn.gelu(h, approximate=gelu_approximate)
    out = jnp.dot(h.astype(w2_ref.dtype), w2_ref[...],
                  preferred_element_type=jnp.float32)
    # dropout p=0.0 == identity
    o_ref[...] = (out + b2_ref[...]).astype(o_ref.dtype)


def _mlp_kernel_chunked(x_ref, w1_ref, b1_ref, w2_ref, b2_ref, o_ref, acc_ref, *,
                        mxu_dtype, act_dtype, gelu_approximate):
    """Hidden dim chunked over grid axis 1 (n_h >= 2 guaranteed by wrapper)."""
    j = pl.program_id(1)
    nj = pl.num_programs(1)

    x = x_ref[...].astype(mxu_dtype)
    h = jnp.dot(x, w1_ref[...], preferred_element_type=jnp.float32)
    h = h.astype(act_dtype) + b1_ref[...].astype(act_dtype)
    h = jax.nn.gelu(h, approximate=gelu_approximate)
    part = jnp.dot(h.astype(w2_ref.dtype), w2_ref[...],
                   preferred_element_type=jnp.float32)

    @pl.when(j == 0)
    def _():  # first chunk: write partial directly (no zero-init + RMW)
        acc_ref[...] = part

    @pl.when(jnp.logical_and(j > 0, j < nj - 1))
    def _():
        acc_ref[...] += part

    @pl.when(j == nj - 1)
    def _():  # last chunk: fold final partial + bias straight into the output
        o_ref[...] = (acc_ref[...] + part + b2_ref[...]).astype(o_ref.dtype)


# --------------------------------------------------------------------------- #
# tiling plan + parameter prep (hoisted out of the per-call path)
# --------------------------------------------------------------------------- #
@dataclass(frozen=True)
class MlpPlan:
    C_in: int
    C_hid: int
    C_out: int
    C_in_p: int
    C_hid_p: int
    C_out_p: int
    tile_m: int
    tile_h: int
    n_h: int
    mxu_dtype: Any
    act_dtype: Any
    out_dtype: Any
    gelu_approximate: bool
    vmem_limit_bytes: int


def plan_mlp_tiling(M, C_in, C_hid, C_out, x_dtype, out_dtype, *,
                    tile_m=None, tile_h=None, use_bf16_mxu=True,
                    gelu_approximate=None, act_in_low_precision=None):
    kind = _device_kind()
    old_gen = any(g in kind for g in ("v2", "v3", "v4", "v5"))

    if gelu_approximate is None:
        # tanh GELU -> EUP slot (free next to the MXU) on v6e/v7x; exact erf on
        # v4/v5 where the slower MXU hides the VALU polynomial and numerics
        # match torch.nn.GELU's default exactly.
        gelu_approximate = not old_gen
    mxu_dtype = jnp.bfloat16 if use_bf16_mxu else jnp.dtype(x_dtype)
    if act_in_low_precision is None:
        act_in_low_precision = use_bf16_mxu and not old_gen
    act_dtype = jnp.bfloat16 if (act_in_low_precision and use_bf16_mxu) else jnp.float32

    C_in_p = _round_up(C_in, 128)
    C_out_p = _round_up(C_out, 128)
    C_hid_min = _round_up(C_hid, 128)

    eb = jnp.dtype(mxu_dtype).itemsize
    xb = jnp.dtype(x_dtype).itemsize
    ob = jnp.dtype(out_dtype).itemsize
    ab = jnp.dtype(act_dtype).itemsize

    cap = _vmem_capacity_bytes()
    budget = (cap * 3) // 4              # ~96 MiB on 128 MiB parts, ~48 MiB on v7x

    def footprint(tm, th, nh):
        wbuf = 1 if (nh == 1 and _SINGLE_BUFFER_OK) else 2
        fp = 2 * tm * C_in_p * xb                          # x tile (double-buffered)
        fp += 2 * tm * C_out_p * ob                        # out tile (double-buffered)
        fp += wbuf * (C_in_p * th + th * C_out_p) * eb     # weight blocks
        fp += wbuf * th * 4 + 2 * C_out_p * 4              # biases (f32)
        fp += tm * th * (4 + ab)                           # fc1 result + act copy
        fp += tm * C_out_p * 4                             # fc2 partial (f32)
        if nh > 1:
            fp += tm * C_out_p * 4                         # accumulator scratch
        return fp

    M_cap = max(_round_up(M, 128), 128)
    if tile_m is not None:
        tm_cands = [min(_round_up(tile_m, 128), M_cap)]
    else:
        tm_cands = sorted({min(t, M_cap) for t in (512, 256, 128)}, reverse=True)

    chosen = None
    if tile_h is not None:
        th = min(_round_up(tile_h, 128), C_hid_min)
        nh = _cdiv(C_hid_min, th)
        th = _round_up(_cdiv(C_hid_min, nh), 128)          # balanced split
        nh = _cdiv(C_hid_min, th)
        for tm in tm_cands:
            if footprint(tm, th, nh) <= budget:
                chosen = (tm, th, nh)
                break
        if chosen is None:
            chosen = (tm_cands[-1], th, nh)
    else:
        # Phase 1: keep the whole hidden dim resident (weights loaded once).
        full = [tm for tm in tm_cands if footprint(tm, C_hid_min, 1) <= budget]
        if full:
            # prefer an even number of row tiles (v7x megacore sharding)
            even = [tm for tm in full if _cdiv(M, tm) % 2 == 0]
            tm = even[0] if even else full[0]
            chosen = (tm, C_hid_min, 1)
        else:
            # Phase 2: chunk the hidden dim; keep tile_m as large as possible
            # to amortize the weight re-streaming per row tile.
            max_nh = max(C_hid_min // 128, 2)
            for tm in tm_cands:
                for nh in range(2, max_nh + 1):
                    th = _round_up(_cdiv(C_hid_min, nh), 128)
                    nh_eff = _cdiv(C_hid_min, th)
                    if footprint(tm, th, nh_eff) <= budget:
                        chosen = (tm, th, nh_eff)
                        break
                if chosen is not None:
                    break
            if chosen is None:
                # last resort: smallest tiles (may still be tight on VMEM)
                th = 128
                chosen = (128, th, _cdiv(C_hid_min, th))

    tm, th, nh = chosen
    C_hid_p = th * nh
    fp = footprint(tm, th, nh)
    vmem_limit = int(min(max(int(fp * 1.5) + (8 << 20), 32 << 20), budget))

    return MlpPlan(C_in=C_in, C_hid=C_hid, C_out=C_out,
                   C_in_p=C_in_p, C_hid_p=C_hid_p, C_out_p=C_out_p,
                   tile_m=tm, tile_h=th, n_h=nh,
                   mxu_dtype=mxu_dtype, act_dtype=act_dtype,
                   out_dtype=jnp.dtype(out_dtype),
                   gelu_approximate=bool(gelu_approximate),
                   vmem_limit_bytes=vmem_limit)


def prepare_mlp_params(w1, b1, w2, b2, plan: MlpPlan):
    """Pad channel dims to 128 multiples and cast to the MXU dtype ONCE.
    Zero padding is exact: gelu(0) = 0 and zero weight rows/cols contribute 0."""
    w1_p = jnp.pad(w1, ((0, plan.C_in_p - plan.C_in),
                        (0, plan.C_hid_p - plan.C_hid))).astype(plan.mxu_dtype)
    w2_p = jnp.pad(w2, ((0, plan.C_hid_p - plan.C_hid),
                        (0, plan.C_out_p - plan.C_out))).astype(plan.mxu_dtype)
    b1_p = jnp.pad(b1, (0, plan.C_hid_p - plan.C_hid)
                   ).reshape(1, plan.C_hid_p).astype(jnp.float32)
    b2_p = jnp.pad(b2, (0, plan.C_out_p - plan.C_out)
                   ).reshape(1, plan.C_out_p).astype(jnp.float32)
    return w1_p, b1_p, w2_p, b2_p


# --------------------------------------------------------------------------- #
# apply
# --------------------------------------------------------------------------- #
def mlp_pallas_apply(x, params, plan: MlpPlan):
    w1_p, b1_p, w2_p, b2_p = params
    *lead, C_in = x.shape
    assert C_in == plan.C_in, "input channel mismatch vs plan"
    M = 1
    for d in lead:
        M *= d

    tm = min(plan.tile_m, _round_up(M, 128))
    M_p = _round_up(M, tm)
    n_m = M_p // tm

    x2d = x.reshape(M, C_in)
    if M_p != M or plan.C_in_p != C_in:
        x2d = jnp.pad(x2d, ((0, M_p - M), (0, plan.C_in_p - C_in)))
    # x stays in its input dtype; it is cast to the MXU dtype inside the kernel
    # (avoids a wrapper-side HBM round trip for activations).

    single = plan.n_h == 1

    def run(single_buffer_weights):
        if single:
            kernel = partial(_mlp_kernel_single,
                             mxu_dtype=plan.mxu_dtype, act_dtype=plan.act_dtype,
                             gelu_approximate=plan.gelu_approximate)
            grid = (n_m,)
            in_specs = [
                pl.BlockSpec((tm, plan.C_in_p), lambda i: (i, 0)),
                _spec((plan.C_in_p, plan.C_hid_p), lambda i: (0, 0),
                      single_buffer=single_buffer_weights),
                _spec((1, plan.C_hid_p), lambda i: (0, 0),
                      single_buffer=single_buffer_weights),
                _spec((plan.C_hid_p, plan.C_out_p), lambda i: (0, 0),
                      single_buffer=single_buffer_weights),
                _spec((1, plan.C_out_p), lambda i: (0, 0),
                      single_buffer=single_buffer_weights),
            ]
            out_specs = pl.BlockSpec((tm, plan.C_out_p), lambda i: (i, 0))
            scratch = []
            dims = ("parallel",)
        else:
            kernel = partial(_mlp_kernel_chunked,
                             mxu_dtype=plan.mxu_dtype, act_dtype=plan.act_dtype,
                             gelu_approximate=plan.gelu_approximate)
            grid = (n_m, plan.n_h)
            in_specs = [
                pl.BlockSpec((tm, plan.C_in_p), lambda i, j: (i, 0)),
                pl.BlockSpec((plan.C_in_p, plan.tile_h), lambda i, j: (0, j)),
                pl.BlockSpec((1, plan.tile_h), lambda i, j: (0, j)),
                pl.BlockSpec((plan.tile_h, plan.C_out_p), lambda i, j: (j, 0)),
                _spec((1, plan.C_out_p), lambda i, j: (0, 0),
                      single_buffer=single_buffer_weights),
            ]
            out_specs = pl.BlockSpec((tm, plan.C_out_p), lambda i, j: (i, 0))
            scratch = [pltpu.VMEM((tm, plan.C_out_p), jnp.float32)]
            dims = ("parallel", "arbitrary")

        return pl.pallas_call(
            kernel,
            out_shape=jax.ShapeDtypeStruct((M_p, plan.C_out_p), plan.out_dtype),
            grid_spec=pltpu.PrefetchScalarGridSpec(
                num_scalar_prefetch=0, grid=grid,
                in_specs=in_specs, out_specs=out_specs,
                scratch_shapes=scratch),
            compiler_params=pltpu.CompilerParams(
                dimension_semantics=dims,
                vmem_limit_bytes=plan.vmem_limit_bytes),
        )(x2d, w1_p, b1_p, w2_p, b2_p)

    if _SINGLE_BUFFER_OK:
        try:
            out2d = run(True)
        except Exception:
            out2d = run(False)   # fall back to default double buffering
    else:
        out2d = run(False)

    return out2d[:M, :plan.C_out].reshape(*lead, plan.C_out)


def mlp_pallas(x, w1, b1, w2, b2, **plan_kwargs):
    """Convenience wrapper: plan + prepare params + apply in one call.
    For repeated calls at fixed shapes, hoist plan_mlp_tiling +
    prepare_mlp_params out of the hot path and call mlp_pallas_apply."""
    *lead, C_in = x.shape
    M = 1
    for d in lead:
        M *= d
    plan = plan_mlp_tiling(M, C_in, w1.shape[1], w2.shape[1],
                           x.dtype, x.dtype, **plan_kwargs)
    params = prepare_mlp_params(w1, b1, w2, b2, plan)
    return mlp_pallas_apply(x, params, plan)


def mlp_reference(x, w1, b1, w2, b2):
    # plain-JAX f32 reference matching torch defaults (exact erf GELU)
    h = jnp.einsum("...c,cd->...d", x, w1) + b1
    h = jax.nn.gelu(h, approximate=False)
    return jnp.einsum("...c,cd->...d", h, w2) + b2


# --------------------------------------------------------------------------- #
# demo / self-test
# --------------------------------------------------------------------------- #
if __name__ == "__main__":
    key = jax.random.PRNGKey(0)
    B, Hs, Ws = 2, 16, 16
    in_features, hidden_features, out_features = 32, 64, 32

    k_x, k_w1, k_b1, k_w2, k_b2 = jax.random.split(key, 5)
    x = jax.random.normal(k_x, (B, Hs, Ws, in_features), dtype=jnp.float32)

    lim1 = 1.0 / (in_features ** 0.5)
    lim2 = 1.0 / (hidden_features ** 0.5)
    w1 = jax.random.uniform(k_w1, (in_features, hidden_features), jnp.float32, -lim1, lim1)
    b1 = jax.random.uniform(k_b1, (hidden_features,), jnp.float32, -lim1, lim1)
    w2 = jax.random.uniform(k_w2, (hidden_features, out_features), jnp.float32, -lim2, lim2)
    b2 = jax.random.uniform(k_b2, (out_features,), jnp.float32, -lim2, lim2)

    out = mlp_pallas(x, w1, b1, w2, b2)
    out = jax.block_until_ready(out)

    ref = mlp_reference(x, w1, b1, w2, b2)
    assert out.shape == ref.shape
    # bf16 MXU operands (+ tanh GELU on newer chips) vs the pure-f32 erf
    # reference -> slightly loosened tolerance.
    assert jnp.allclose(out, ref, atol=3e-2, rtol=3e-2), "mismatch vs reference"

    print("KERNEL_OK")
</pallas_src>

<mosaic_0001>
module attributes {stable_mosaic.version = 11 : i64} {
  func.func @_mlp_kernel_single(%arg0: i32, %arg1: memref<256x128xf32, #tpu.memory_space<vmem>>, %arg2: memref<128x128xbf16, #tpu.memory_space<vmem>>, %arg3: memref<1x128xf32, #tpu.memory_space<vmem>>, %arg4: memref<128x128xbf16, #tpu.memory_space<vmem>>, %arg5: memref<1x128xf32, #tpu.memory_space<vmem>>, %arg6: memref<256x128xf32, #tpu.memory_space<vmem>>) attributes {dimension_semantics = [#tpu.dimension_semantics<parallel>], iteration_bounds = array<i64: 2>, scalar_prefetch = 0 : i64, scratch_operands = 0 : i64, tpu.core_type = #tpu.core_type<tc>, window_params = [{transform_indices = @transform_0, window_bounds = array<i64: 256, 128>}, {pipeline_mode = #tpu.pipeline_mode<synchronous>, transform_indices = @transform_1, window_bounds = array<i64: 128, 128>}, {pipeline_mode = #tpu.pipeline_mode<synchronous>, transform_indices = @transform_2, window_bounds = array<i64: 1, 128>}, {pipeline_mode = #tpu.pipeline_mode<synchronous>, transform_indices = @transform_3, window_bounds = array<i64: 128, 128>}, {pipeline_mode = #tpu.pipeline_mode<synchronous>, transform_indices = @transform_4, window_bounds = array<i64: 1, 128>}, {transform_indices = @transform_5, window_bounds = array<i64: 256, 128>}]} {
    %c0 = arith.constant 0 : index
    %c0_0 = arith.constant 0 : index
    %0 = vector.load %arg1[%c0, %c0_0] : memref<256x128xf32, #tpu.memory_space<vmem>>, vector<256x128xf32>
    %1 = arith.truncf %0 : vector<256x128xf32> to vector<256x128xbf16>
    %c0_1 = arith.constant 0 : index
    %c0_2 = arith.constant 0 : index
    %2 = vector.load %arg2[%c0_1, %c0_2] : memref<128x128xbf16, #tpu.memory_space<vmem>>, vector<128x128xbf16>
    %cst = arith.constant dense<0.000000e+00> : vector<256x128xf32>
    %3 = tpu.matmul %1, %2, %cst {dimension_numbers = #tpu.dot_dimension_numbers<[1], [0], [0], [1], [0, 0, 1, 1], [], []>} : vector<256x128xbf16>, vector<128x128xbf16>, vector<256x128xf32> -> vector<256x128xf32>
    %4 = arith.truncf %3 : vector<256x128xf32> to vector<256x128xbf16>
    %c0_3 = arith.constant 0 : index
    %c0_4 = arith.constant 0 : index
    %5 = vector.load %arg3[%c0_3, %c0_4] : memref<1x128xf32, #tpu.memory_space<vmem>>, vector<1x128xf32>
    %6 = arith.truncf %5 : vector<1x128xf32> to vector<1x128xbf16>
    %7 = vector.broadcast %6 : vector<1x128xbf16> to vector<256x128xbf16>
    %8 = arith.addf %4, %7 : vector<256x128xbf16>
    %9 = arith.mulf %8, %8 : vector<256x128xbf16>
    %10 = arith.mulf %8, %9 : vector<256x128xbf16>
    %cst_5 = arith.constant 4.467770e-02 : bf16
    %11 = vector.broadcast %cst_5 : bf16 to vector<256x128xbf16>
    %12 = arith.mulf %11, %10 : vector<256x128xbf16>
    %13 = arith.addf %8, %12 : vector<256x128xbf16>
    %cst_6 = arith.constant 7.968750e-01 : bf16
    %14 = vector.broadcast %cst_6 : bf16 to vector<256x128xbf16>
    %15 = arith.mulf %14, %13 : vector<256x128xbf16>
    %16 = math.tanh %15 : vector<256x128xbf16>
    %cst_7 = arith.constant 1.000000e+00 : bf16
    %17 = vector.broadcast %cst_7 : bf16 to vector<256x128xbf16>
    %18 = arith.addf %17, %16 : vector<256x128xbf16>
    %cst_8 = arith.constant 5.000000e-01 : bf16
    %19 = vector.broadcast %cst_8 : bf16 to vector<256x128xbf16>
    %20 = arith.mulf %19, %18 : vector<256x128xbf16>
    %21 = arith.mulf %8, %20 : vector<256x128xbf16>
    %c0_9 = arith.constant 0 : index
    %c0_10 = arith.constant 0 : index
    %22 = vector.load %arg4[%c0_9, %c0_10] : memref<128x128xbf16, #tpu.memory_space<vmem>>, vector<128x128xbf16>
    %cst_11 = arith.constant dense<0.000000e+00> : vector<256x128xf32>
    %23 = tpu.matmul %21, %22, %cst_11 {dimension_numbers = #tpu.dot_dimension_numbers<[1], [0], [0], [1], [0, 0, 1, 1], [], []>} : vector<256x128xbf16>, vector<128x128xbf16>, vector<256x128xf32> -> vector<256x128xf32>
    %c0_12 = arith.constant 0 : index
    %c0_13 = arith.constant 0 : index
    %24 = vector.load %arg5[%c0_12, %c0_13] : memref<1x128xf32, #tpu.memory_space<vmem>>, vector<1x128xf32>
    %25 = vector.broadcast %24 : vector<1x128xf32> to vector<256x128xf32>
    %26 = arith.addf %23, %25 : vector<256x128xf32>
    %c0_14 = arith.constant 0 : index
    %c0_15 = arith.constant 0 : index
    %27 = vector.load %arg6[%c0_14, %c0_15] : memref<256x128xf32, #tpu.memory_space<vmem>>, vector<256x128xf32>
    tpu.vector_store %arg6[%c0_14, %c0_15], %26 {strides = array<i32>} : memref<256x128xf32, #tpu.memory_space<vmem>>, vector<256x128xf32>,
    return
  }
  func.func @transform_0(%arg0: i32) -> (i32, i32) {
    %c0_i32 = arith.constant 0 : i32
    %c0_i32_0 = arith.constant 0 : i32
    return %arg0, %c0_i32 : i32, i32
  }
  func.func @transform_1(%arg0: i32) -> (i32, i32) {
    %c0_i32 = arith.constant 0 : i32
    %c0_i32_0 = arith.constant 0 : i32
    %c0_i32_1 = arith.constant 0 : i32
    return %c0_i32, %c0_i32_0 : i32, i32
  }
  func.func @transform_2(%arg0: i32) -> (i32, i32) {
    %c0_i32 = arith.constant 0 : i32
    %c0_i32_0 = arith.constant 0 : i32
    %c0_i32_1 = arith.constant 0 : i32
    return %c0_i32, %c0_i32_0 : i32, i32
  }
  func.func @transform_3(%arg0: i32) -> (i32, i32) {
    %c0_i32 = arith.constant 0 : i32
    %c0_i32_0 = arith.constant 0 : i32
    %c0_i32_1 = arith.constant 0 : i32
    return %c0_i32, %c0_i32_0 : i32, i32
  }
  func.func @transform_4(%arg0: i32) -> (i32, i32) {
    %c0_i32 = arith.constant 0 : i32
    %c0_i32_0 = arith.constant 0 : i32
    %c0_i32_1 = arith.constant 0 : i32
    return %c0_i32, %c0_i32_0 : i32, i32
  }
  func.func @transform_5(%arg0: i32) -> (i32, i32) {
    %c0_i32 = arith.constant 0 : i32
    %c0_i32_0 = arith.constant 0 : i32
    return %arg0, %c0_i32 : i32, i32
  }
}

module attributes {stable_mosaic.version = 11 : i64} {
  func.func @_mlp_kernel_single(%arg0: i32, %arg1: memref<256x128xf32, #tpu.memory_space<vmem>>, %arg2: memref<128x128xbf16, #tpu.memory_space<vmem>>, %arg3: memref<1x128xf32, #tpu.memory_space<vmem>>, %arg4: memref<128x128xbf16, #tpu.memory_space<vmem>>, %arg5: memref<1x128xf32, #tpu.memory_space<vmem>>, %arg6: memref<256x128xf32, #tpu.memory_space<vmem>>) attributes {dimension_semantics = [#tpu.dimension_semantics<parallel>], iteration_bounds = array<i64: 2>, scalar_prefetch = 0 : i64, scratch_operands = 0 : i64, tpu.core_type = #tpu.core_type<tc>, window_params = [{transform_indices = @transform_0, window_bounds = array<i64: 256, 128>}, {pipeline_mode = #tpu.pipeline_mode<synchronous>, transform_indices = @transform_1, window_bounds = array<i64: 128, 128>}, {pipeline_mode = #tpu.pipeline_mode<synchronous>, transform_indices = @transform_2, window_bounds = array<i64: 1, 128>}, {pipeline_mode = #tpu.pipeline_mode<synchronous>, transform_indices = @transform_3, window_bounds = array<i64: 128, 128>}, {pipeline_mode = #tpu.pipeline_mode<synchronous>, transform_indices = @transform_4, window_bounds = array<i64: 1, 128>}, {transform_indices = @transform_5, window_bounds = array<i64: 256, 128>}]} {
    %c0 = arith.constant 0 : index
    %c0_0 = arith.constant 0 : index
    %0 = vector.load %arg1[%c0, %c0_0] : memref<256x128xf32, #tpu.memory_space<vmem>>, vector<256x128xf32>
    %1 = arith.truncf %0 : vector<256x128xf32> to vector<256x128xbf16>
    %c0_1 = arith.constant 0 : index
    %c0_2 = arith.constant 0 : index
    %2 = vector.load %arg2[%c0_1, %c0_2] : memref<128x128xbf16, #tpu.memory_space<vmem>>, vector<128x128xbf16>
    %cst = arith.constant dense<0.000000e+00> : vector<256x128xf32>
    %3 = tpu.matmul %1, %2, %cst {dimension_numbers = #tpu.dot_dimension_numbers<[1], [0], [0], [1], [0, 0, 1, 1], [], []>} : vector<256x128xbf16>, vector<128x128xbf16>, vector<256x128xf32> -> vector<256x128xf32>
    %4 = arith.truncf %3 : vector<256x128xf32> to vector<256x128xbf16>
    %c0_3 = arith.constant 0 : index
    %c0_4 = arith.constant 0 : index
    %5 = vector.load %arg3[%c0_3, %c0_4] : memref<1x128xf32, #tpu.memory_space<vmem>>, vector<1x128xf32>
    %6 = arith.truncf %5 : vector<1x128xf32> to vector<1x128xbf16>
    %7 = vector.broadcast %6 : vector<1x128xbf16> to vector<256x128xbf16>
    %8 = arith.addf %4, %7 : vector<256x128xbf16>
    %9 = arith.mulf %8, %8 : vector<256x128xbf16>
    %10 = arith.mulf %8, %9 : vector<256x128xbf16>
    %cst_5 = arith.constant 4.467770e-02 : bf16
    %11 = vector.broadcast %cst_5 : bf16 to vector<256x128xbf16>
    %12 = arith.mulf %11, %10 : vector<256x128xbf16>
    %13 = arith.addf %8, %12 : vector<256x128xbf16>
    %cst_6 = arith.constant 7.968750e-01 : bf16
    %14 = vector.broadcast %cst_6 : bf16 to vector<256x128xbf16>
    %15 = arith.mulf %14, %13 : vector<256x128xbf16>
    %16 = math.tanh %15 : vector<256x128xbf16>
    %cst_7 = arith.constant 1.000000e+00 : bf16
    %17 = vector.broadcast %cst_7 : bf16 to vector<256x128xbf16>
    %18 = arith.addf %17, %16 : vector<256x128xbf16>
    %cst_8 = arith.constant 5.000000e-01 : bf16
    %19 = vector.broadcast %cst_8 : bf16 to vector<256x128xbf16>
    %20 = arith.mulf %19, %18 : vector<256x128xbf16>
    %21 = arith.mulf %8, %20 : vector<256x128xbf16>
    %c0_9 = arith.constant 0 : index
    %c0_10 = arith.constant 0 : index
    %22 = vector.load %arg4[%c0_9, %c0_10] : memref<128x128xbf16, #tpu.memory_space<vmem>>, vector<128x128xbf16>
    %cst_11 = arith.constant dense<0.000000e+00> : vector<256x128xf32>
    %23 = tpu.matmul %21, %22, %cst_11 {dimension_numbers = #tpu.dot_dimension_numbers<[1], [0], [0], [1], [0, 0, 1, 1], [], []>} : vector<256x128xbf16>, vector<128x128xbf16>, vector<256x128xf32> -> vector<256x128xf32>
    %c0_12 = arith.constant 0 : index
    %c0_13 = arith.constant 0 : index
    %24 = vector.load %arg5[%c0_12, %c0_13] : memref<1x128xf32, #tpu.memory_space<vmem>>, vector<1x128xf32>
    %25 = vector.broadcast %24 : vector<1x128xf32> to vector<256x128xf32>
    %26 = arith.addf %23, %25 : vector<256x128xf32>
    %c0_14 = arith.constant 0 : index
    %c0_15 = arith.constant 0 : index
    %27 = vector.load %arg6[%c0_14, %c0_15] : memref<256x128xf32, #tpu.memory_space<vmem>>, vector<256x128xf32>
    tpu.vector_store %arg6[%c0_14, %c0_15], %26 {strides = array<i32>} : memref<256x128xf32, #tpu.memory_space<vmem>>, vector<256x128xf32>,
    return
  }
  func.func @transform_0(%arg0: i32) -> (i32, i32) {
    %c0_i32 = arith.constant 0 : i32
    %c0_i32_0 = arith.constant 0 : i32
    return %arg0, %c0_i32 : i32, i32
  }
  func.func @transform_1(%arg0: i32) -> (i32, i32) {
    %c0_i32 = arith.constant 0 : i32
    %c0_i32_0 = arith.constant 0 : i32
    %c0_i32_1 = arith.constant 0 : i32
    return %c0_i32, %c0_i32_0 : i32, i32
  }
  func.func @transform_2(%arg0: i32) -> (i32, i32) {
    %c0_i32 = arith.constant 0 : i32
    %c0_i32_0 = arith.constant 0 : i32
    %c0_i32_1 = arith.constant 0 : i32
    return %c0_i32, %c0_i32_0 : i32, i32
  }
  func.func @transform_3(%arg0: i32) -> (i32, i32) {
    %c0_i32 = arith.constant 0 : i32
    %c0_i32_0 = arith.constant 0 : i32
    %c0_i32_1 = arith.constant 0 : i32
    return %c0_i32, %c0_i32_0 : i32, i32
  }
  func.func @transform_4(%arg0: i32) -> (i32, i32) {
    %c0_i32 = arith.constant 0 : i32
    %c0_i32_0 = arith.constant 0 : i32
    %c0_i32_1 = arith.constant 0 : i32
    return %c0_i32, %c0_i32_0 : i32, i32
  }
  func.func @transform_5(%arg0: i32) -> (i32, i32) {
    %c0_i32 = arith.constant 0 : i32
    %c0_i32_0 = arith.constant 0 : i32
    return %arg0, %c0_i32 : i32, i32
  }
}

</mosaic_0001>

<bundles_post_ra>
// kernel: tpu_custom_call.1
= control target key start
LH: loop header
LB: loop body
LE: loop exit
PB: predicated region body
PF: predicated region fallthrough
CT: control target
= control target key end

     0   :  { %10 = vsyncpa [#allocation3], 0  ;;  %s2023_s0 = inlined_call_operand.hbm [shape: f32[512,128], index: 0, kind: input, shape index: {}]   ;;  %s2024_s1 = inlined_call_operand.hbm [shape: bf16[128,128], index: 1, kind: input, shape index: {}]   ;;  %s2025_s2 = inlined_call_operand.vmem [shape: f32[1,128], index: 2, kind: input, shape index: {}]   ;;  %s2026_s3 = inlined_call_operand.hbm [shape: bf16[128,128], index: 3, kind: input, shape index: {}]   ;;  %s2027_s4 = inlined_call_operand.vmem [shape: f32[1,128], index: 4, kind: input, shape index: {}]   ;;  %s2028_s5 = inlined_call_operand.hbm [shape: f32[512,128], index: 5, kind: output, shape index: {}]  }
   0x1   :  { %12 = vsyncpa [#allocation3 + $0x1], 0 }
   0x2   :  { %13 = vsyncpa [#allocation6], 0 }
   0x3   :  { %14 = vsyncpa [#allocation4], 0 }
   0x4   :  { %16 = vsyncpa [#allocation4 + $0x1], 0  ;;  %s1599_s18 = smov 0   ;;  %s1601_s19 = smov 0  }
   0x5   :  { %s1603_s20 = smov 0   ;;  %s1605_s21 = smov 0  }
   0x6 LB: > { %s1620_s22 = sadd.s32 4294967295, %s1557_s21   ;;  %s1107_s23 = sadd.s32 4294967294, %s1557_s21   ;;  %s1557_s21 = sphi %s1605_s21, %s2050_s21   ;;  %s1553_s20 = sphi %s1603_s20, %s2049_s20   ;;  %s1549_s19 = sphi %s1601_s19, %s2048_s19   ;;  %s1545_s18 = sphi %s1599_s18, %s2047_s18  }
   0x7   : > { %p42_p0 = scmp.ne.s32.totalorder %s1549_s19, %s1545_s18  ;;  %p2029_p1 = scmp.eq.s32.totalorder %s1620_s22, 0 }
   0x8   : > { %p156_p3 = scmp.eq.s32.totalorder %s1107_s23, 1  ;;  %p1108_p5 = scmp.ge.s32.totalorder %s1557_s21, 1 }
   0x9   : > { %p1629_p4 = por %p2029_p1, %p42_p0  ;;  %p163_p7 = scmp.lt.s32.totalorder %s1557_s21, 3 }
   0xa   : > { %p1634_p6 = por %p156_p3, %p42_p0  ;;  %s1559_s27 = smov [#allocation5]  }
   0xb   : > { %s2033_s24 = scalar_select %p1629_p4, 1, 0 }
   0xc   : > { %s2034_s25 = scalar_select %p1634_p6, 1, 0 }
   0xd   : > { %p1639_p8 = pnand %p1108_p5, %p163_p7  ;;  %s175_s28 = sshll.u32 %s1559_s27, 4  ;;  %s176_s28 = int_to_ptr.vmem [resolvable:$true] %s175_s28 }
   0xe   : > { %s1560_s30 = smov [#allocation7]   ;;  %s1420_s7 = scalar_lea.vmem %s176_s28, 1024 }
   0xf   : > { %s2035_s26 = scalar_select %p1639_p8, 1, 0 }
  0x10   : > { %p1300_p9 = pneg %p1639_p8  ;;  %s191_s6 = sshll.u32 %s1560_s30, 4  ;;  %s192_s6 = int_to_ptr.vmem [resolvable:$true] %s191_s6 }
  0x11   : > { %p1421_p13 = scmp.ne.s32.totalorder %s176_s28, %s1420_s7  ;;  %p1428_p5 = scmp.lt.s32.totalorder %s176_s28, %s176_s28 }
  0x12   : > { %p1648_p11 = pnand %p1300_p9, %p2029_p1  ;;  %p1429_p7 = scmp.lt.s32.totalorder %s1420_s7, %s1420_s7 }
  0x14   : > { %p1411_p12 = pneg %p1648_p11  ;;  %p1430_p10 = por %p1429_p7, %p1428_p5 }
  0x16   : > { %p1423_p0 = pnand %p1421_p13, %p1411_p12 }
  0x18   : > { %p1424_p3 = pneg %p1423_p0 }
  0x1a   : > { %p1431_p9 = pnand %p1430_p10, %p1424_p3 }
  0x1c   : > { %1434 = shalt.err (!%p1431_p9)
}
  0x1d   : > { %s1561_s8 = smov 64   ;;  %s1562_s9 = smov 4  }
  0x1e   : > { %1303 = dma.hbm_to_vmem [thread:$0]  (!%p1648_p11), %s2024_s1, 1024, %s176_s28, [#allocation6], %s1561_s8, %s1561_s8, %s1562_s9  }
  0x1f   : > { %s1446_s12 = scalar_lea.vmem %s192_s6, 1024  ;;  %p1454_p2 = scmp.lt.s32.totalorder %s192_s6, %s192_s6 }
  0x20   : > { %p1447_p1 = scmp.ne.s32.totalorder %s192_s6, %s1446_s12  ;;  %p1455_p6 = scmp.lt.s32.totalorder %s1446_s12, %s1446_s12 }
  0x22   : > { %p1449_p13 = pnand %p1447_p1, %p1411_p12  ;;  %p1456_p5 = por %p1455_p6, %p1454_p2 }
  0x24   : > { %p1450_p0 = pneg %p1449_p13 }
  0x26   : > { %p1457_p10 = pnand %p1456_p5, %p1450_p0 }
  0x28   : > { %1460 = shalt.err (!%p1457_p10)
}
  0x29   : > { %1306 = dma.hbm_to_vmem [thread:$0]  (!%p1648_p11), %s2026_s3, 1024, %s192_s6, [#allocation6], %s1561_s8, %s1561_s8, %s1562_s9  }
  0x2a   : > { %s1671_s15 = sadd.s32 1, %s1557_s21   ;;  %s29_s16 = sadd.s32 1, %s1553_s20 }
  0x2b   : > { %s26_s17 = ssub.s32 %s1557_s21, %s1671_s15  ;;  %p36_p1 = scmp.ne.s32.totalorder %s1553_s20, %s1549_s19 }
  0x2c   : > { %p27_p2 = scmp.eq.s32.totalorder %s26_s17, 0  ;;  %p37_p6 = scmp.eq.s32.totalorder %s1557_s21, 0 }
  0x2d   : > { %p2037_p12 = scmp.eq.s32.totalorder %s1620_s22, 1  ;;  %p1317_p7 = scmp.lt.s32.totalorder %s1557_s21, 2 }
  0x2e   : > { %s1687_s27 = scalar_select %p27_p2, %s1553_s20, %s29_s16  }
  0x2f   : > { %p1681_p3 = por %p2037_p12, %p36_p1  ;;  %p38_p9 = por %p37_p6, %p36_p1 }
  0x30   : > { %s208_s28 = sand.u32 1, %s1553_s20   ;;  %s1142_s30 = sshll.u32 %s1557_s21, 12 }
  0x31   : > { %s2038_s23 = scalar_select %p1681_p3, 1, 0 }
  0x32   : > { %s1112_s29 = sshll.u32 %s208_s28, 8  ;;  %s1694_s8 = scalar_lea.hbm %s2023_s0, %s1142_s30 }
  0x33   : > { %s212_s9 = scalar_lea.vmem [#allocation2], %s1112_s29  ;;  %p1698_p11 = pnand %p1317_p7, %p38_p9 }
  0x34   : > { %s219_s10 = sshll.u32 %s212_s9, 4  ;;  %s1702_s12 = scalar_lea.sflag [#allocation3], %s208_s28  ;;  %s1696_s10 = int_to_ptr.vmem [resolvable:$true] %s219_s10 }
  0x35   : > { %s1461_s13 = scalar_lea.hbm %s1694_s8, 4096  ;;  %p1463_p0 = pneg %p1698_p11 }
  0x36   : > { %p1462_p13 = scmp.ne.s32.totalorder %s1694_s8, %s1461_s13  ;;  %s1466_s17 = scalar_lea.hbm %s2023_s0, 8192 }
  0x37   : > { %p1467_p1 = scmp.lt.s32.totalorder %s1694_s8, %s2023_s0  ;;  %p1468_p2 = scmp.lt.s32.totalorder %s1466_s17, %s1461_s13 }
  0x38   : > { %p1464_p5 = pnand %p1463_p0, %p1462_p13 }
  0x39   : > { %p1469_p6 = por %p1468_p2, %p1467_p1 }
  0x3a   : > { %p1465_p10 = pneg %p1464_p5 }
  0x3c   : > { %p1470_p12 = pnand %p1469_p6, %p1465_p10 }
  0x3e   : > { %1473 = shalt.err (!%p1470_p12)
}
  0x3f   : > { %s1474_s28 = scalar_lea.vmem %s1696_s10, 4096  ;;  %s1563_s6 = smov [#allocation2]  }
  0x40   : > { %p1475_p7 = scmp.ne.s32.totalorder %s1696_s10, %s1474_s28  ;;  %s1479_s7 = sshll.u32 %s1563_s6, 4  ;;  %s1480_s7 = int_to_ptr.vmem [resolvable:$false] %s1479_s7 }
  0x41   : > { %s1481_s9 = scalar_lea.vmem %s1480_s7, 8192  ;;  %p1482_p5 = scmp.lt.s32.totalorder %s1696_s10, %s1480_s7 }
  0x42   : > { %p1477_p9 = pnand %p1475_p7, %p1463_p0  ;;  %p1483_p3 = scmp.lt.s32.totalorder %s1481_s9, %s1474_s28 }
  0x44   : > { %p1478_p13 = pneg %p1477_p9  ;;  %p1484_p4 = por %p1483_p3, %p1482_p5 }
  0x46   : > { %p1485_p8 = pnand %p1484_p4, %p1478_p13 }
  0x48   : > { %1488 = shalt.err (!%p1485_p8)
}
  0x49   : > { %s1564_s13 = smov 128   ;;  %s1565_s14 = smov 8  }
  0x4a   : > { %1310 = dma.hbm_to_vmem [thread:$0]  (!%p1698_p11), %s1694_s8, 4096, %s1696_s10, %s1702_s12, %s1564_s13, %s1564_s13, %s1565_s14  }
  0x4b   : > { %p2040_p0 = scmp.ne.s32.totalorder %s2035_s26, 0 }
  0x4c   : > { %s1726_s16 = sand.u32 (!%p2040_p0), 1, %s1549_s19   ;;  %p2041_p4 = scmp.ne.s32.totalorder (!%p2040_p0), %s2033_s24, 0 }
  0x4d   : > { %231 = sbr.rel (%p2040_p0) target bundleno = 625 (0x271), region = 40  ;;  %s1116_s17 = sshll.u32 (!%p2040_p0), %s1726_s16, 8 }
  0x4e   : > { %s234_s29 = scalar_lea.sflag (!%p2040_p0), [#allocation3], %s1726_s16  ;;  %s1732_s30 = scalar_lea.vmem (!%p2040_p0), [#allocation2], %s1116_s17 }
  0x52   : > { %1532 = dma.done.wait (%p2041_p4), %s234_s29, 4096  }
  0x53   : > { %1534 = vsyncadd (%p2041_p4), %s234_s29, 4294963200  ;;  %p2042_p8 = scmp.eq.s32.totalorder %s1620_s22, 0 }
  0x55   : > { %1536 = dma.done.wait (%p2042_p8), [#allocation6], 2048   ;;  %p2043_p3 = pmov %p2042_p8 }
  0x56   : > { %v1361_v0 = vld [vmem:[#allocation5 + $0x38] sm:$0xff]   ;;  %v1362_v1 = vld [vmem:[#allocation5 + $0x30] sm:$0xff]   ;;  %v1363_v2 = vld [vmem:[#allocation5 + $0x28] sm:$0xff]   ;;  %s1908_s11 = scalar_lea.vmem [#allocation8], %s1116_s17  ;;  %s1143_s12 = sshll.u32 %s1620_s22, 12 }
  0x57   : > { %1538 = vsyncadd (%p2043_p3), [#allocation6], 4294965248  ;;  %1192 = vmatprep.subr.bf16.mxu0 %v1361_v0  ;;  %v1364_v3 = vld [vmem:[#allocation5 + $0x20] sm:$0xff]   ;;  %v280_v5 = vld [vmem:[%s1732_s30 + $0x8] sm:$0xff]  ;;  %s1015_s28 = sshll.u32 %s1908_s11, 4  ;;  %s1975_s9 = scalar_lea.hbm %s2028_s5, %s1143_s12  ;;  %s1977_s28 = int_to_ptr.vmem [resolvable:$true] %s1015_s28 }
  0x58   : > { %1193 = vmatpush3.bf16.msra.mxu0 %v1361_v0  ;;  %v279_v4 = vld [vmem:[%s1732_s30] sm:$0xff]  ;;  %v1365_v7 = vld [vmem:[#allocation5 + $0x18] sm:$0xff]   ;;  %v1366_v8 = vld [vmem:[#allocation5 + $0x10] sm:$0xff]   ;;  %v573_v0 = vlaneseq  ;;  %s1002_s22 = scalar_lea.sflag [#allocation4], %s1726_s16  ;;  %s1489_s13 = scalar_lea.vmem %s1977_s28, 4096 }
  0x59   : > { %1194 = vmatprep.subr.bf16.mxu0 %v1362_v1  ;;  %v311_v6 = vpack.c.bf16 %v280_v5, %v279_v4  ;;  %v1367_v9 = vld [vmem:[#allocation5 + $0x8] sm:$0xff]   ;;  %v1368_v10 = vld [vmem:[#allocation5] sm:$0xff]   ;;  %v281_v11 = vld [vmem:[%s1732_s30 + $0x10] sm:$0xff]  ;;  %p1490_p11 = scmp.ne.s32.totalorder %s1977_s28, %s1489_s13  ;;  %p2044_p10 = scmp.ne.s32.totalorder %s2038_s23, 0 }
  0x5a   : > { %v282_v12 = vld [vmem:[%s1732_s30 + $0x18] sm:$0xff]  ;;  %v283_v13 = vld [vmem:[%s1732_s30 + $0x20] sm:$0xff]  ;;  %v284_v14 = vld [vmem:[%s1732_s30 + $0x28] sm:$0xff]  ;;  %s1566_s14 = smov [#allocation8]  }
  0x5b   : > { %1208 = vmatprep.mubr.bf16.mxu0 %v311_v6  ;;  %v312_v15 = vpack.c.bf16 %v282_v12, %v281_v11  ;;  %v313_v16 = vpack.c.bf16 %v284_v14, %v283_v13  ;;  %v285_v17 = vld [vmem:[%s1732_s30 + $0x30] sm:$0xff]  ;;  %v286_v18 = vld [vmem:[%s1732_s30 + $0x38] sm:$0xff]  ;;  %v287_v19 = vld [vmem:[%s1732_s30 + $0x40] sm:$0xff]  ;;  %p1491_p1 = pnand %p1490_p11, %p2044_p10  ;;  %s1493_s17 = sshll.u32 %s1566_s14, 4  ;;  %s1494_s17 = int_to_ptr.vmem [resolvable:$false] %s1493_s17 }
  0x5c   : > { %1195 = vmatpush3.bf16.msra.mxu0 %v1362_v1  ;;  %v288_v20 = vld [vmem:[%s1732_s30 + $0x48] sm:$0xff]  ;;  %v314_v21 = vpack.c.bf16 %v286_v18, %v285_v17  ;;  %v289_v23 = vld [vmem:[%s1732_s30 + $0x50] sm:$0xff]  ;;  %v290_v24 = vld [vmem:[%s1732_s30 + $0x58] sm:$0xff]  ;;  %s1495_s29 = scalar_lea.vmem %s1494_s17, 8192  ;;  %p1496_p6 = scmp.lt.s32.totalorder %s1977_s28, %s1494_s17 }
  0x5d   : > { %1196 = vmatprep.subr.bf16.mxu0 %v1363_v2  ;;  %v315_v22 = vpack.c.bf16 %v288_v20, %v287_v19  ;;  %v291_v25 = vld [vmem:[%s1732_s30 + $0x60] sm:$0xff]  ;;  %v292_v26 = vld [vmem:[%s1732_s30 + $0x68] sm:$0xff]  ;;  %v316_v27 = vpack.c.bf16 %v290_v24, %v289_v23  ;;  %v293_v29 = vld [vmem:[%s1732_s30 + $0x70] sm:$0xff]  ;;  %p1492_p2 = pneg %p1491_p1  ;;  %p1497_p12 = scmp.lt.s32.totalorder %s1495_s29, %s1489_s13 }
  0x5e   : > { %v317_v28 = vpack.c.bf16 %v292_v26, %v291_v25  ;;  %v294_v30 = vld [vmem:[%s1732_s30 + $0x78] sm:$0xff]  ;;  %v295_v31 = vld [vmem:[%s1732_s30 + $0x80] sm:$0xff]  ;;  %v296_v32 = vld [vmem:[%s1732_s30 + $0x88] sm:$0xff] }
  0x5f   : > { %v318_v33 = vpack.c.bf16 %v294_v30, %v293_v29  ;;  %v319_v34 = vpack.c.bf16 %v296_v32, %v295_v31  ;;  %v297_v35 = vld [vmem:[%s1732_s30 + $0x90] sm:$0xff]  ;;  %v298_v36 = vld [vmem:[%s1732_s30 + $0x98] sm:$0xff]  ;;  %v299_v37 = vld [vmem:[%s1732_s30 + $0xa0] sm:$0xff]  ;;  %p1498_p7 = por %p1497_p12, %p1496_p6 }
  0x60   : > { %1197 = vmatpush3.bf16.msra.mxu0 %v1363_v2  ;;  %v300_v38 = vld [vmem:[%s1732_s30 + $0xa8] sm:$0xff]  ;;  %v320_v39 = vpack.c.bf16 %v298_v36, %v297_v35  ;;  %v301_v41 = vld [vmem:[%s1732_s30 + $0xb0] sm:$0xff]  ;;  %v302_v42 = vld [vmem:[%s1732_s30 + $0xb8] sm:$0xff] }
  0x61   : > { %1198 = vmatprep.subr.bf16.mxu0 %v1364_v3  ;;  %v321_v40 = vpack.c.bf16 %v300_v38, %v299_v37  ;;  %v303_v43 = vld [vmem:[%s1732_s30 + $0xc0] sm:$0xff]  ;;  %v304_v44 = vld [vmem:[%s1732_s30 + $0xc8] sm:$0xff]  ;;  %v322_v45 = vpack.c.bf16 %v302_v42, %v301_v41  ;;  %v305_v47 = vld [vmem:[%s1732_s30 + $0xd0] sm:$0xff]  ;;  %p1499_p9 = pnand %p1498_p7, %p1492_p2 }
  0x62   : > { %v323_v46 = vpack.c.bf16 %v304_v44, %v303_v43  ;;  %v306_v48 = vld [vmem:[%s1732_s30 + $0xd8] sm:$0xff]  ;;  %v307_v49 = vld [vmem:[%s1732_s30 + $0xe0] sm:$0xff]  ;;  %v308_v50 = vld [vmem:[%s1732_s30 + $0xe8] sm:$0xff] }
  0x63   : > { %v324_v51 = vpack.c.bf16 %v306_v48, %v305_v47  ;;  %v325_v52 = vpack.c.bf16 %v308_v50, %v307_v49  ;;  %v309_v53 = vld [vmem:[%s1732_s30 + $0xf0] sm:$0xff]  ;;  %v310_v54 = vld [vmem:[%s1732_s30 + $0xf8] sm:$0xff]  ;;  %v1371_v58 = vld [vmem:[#allocation7 + $0x28] sm:$0xff]  }
  0x64   : > { %1199 = vmatpush3.bf16.msra.mxu0 %v1364_v3  ;;  %v326_v55 = vpack.c.bf16 %v310_v54, %v309_v53  ;;  %v1369_v56 = vld [vmem:[#allocation7 + $0x38] sm:$0xff]   ;;  %v1370_v57 = vld [vmem:[#allocation7 + $0x30] sm:$0xff]   ;;  %v1372_v59 = vld [vmem:[#allocation7 + $0x20] sm:$0xff]   ;;  %v574_v3 = vshrl.u32 %v573_v0, 7 }
  0x65   : > { %1200 = vmatprep.subr.bf16.mxu0 %v1365_v7  ;;  %1240 = vmatprep.subr.bf16.mxu1 %v1369_v56  ;;  %v1373_v60 = vld [vmem:[#allocation7 + $0x18] sm:$0xff]   ;;  %v1374_v61 = vld [vmem:[#allocation7 + $0x10] sm:$0xff]   ;;  %v1375_v62 = vld [vmem:[#allocation7 + $0x8] sm:$0xff]  }
  0x66   : > { %1241 = vmatpush3.bf16.msra.mxu1 %v1369_v56  ;;  %v1376_v63 = vld [vmem:[#allocation7] sm:$0xff]   ;;  %v575_v5 = vsub.s32 0, %v574_v3 }
  0x67   : > { %1242 = vmatprep.subr.bf16.mxu1 %v1370_v57  ;;  %v568_v1 = vld [vmem:[%s2025_s2] sm:$0x1] }
  0x68   : > { %1201 = vmatpush3.bf16.msra.mxu0 %v1365_v7  ;;  %v569_v2 = vpack.c.bf16 %v568_v1, %v568_v1 }
  0x69   : > { %1202 = vmatprep.subr.bf16.mxu0 %v1366_v8 }
  0x6a   : > { %1243 = vmatpush3.bf16.msra.mxu1 %v1370_v57  ;;  %v571_v4 = vpack.i.b16 %v569_v2, %v569_v2 }
  0x6b   : > { %1244 = vmatprep.subr.bf16.mxu1 %v1371_v58 }
  0x6c   : > { %1203 = vmatpush3.bf16.msra.mxu0 %v1366_v8  ;;  %v1777_v8 = vrot.slane %v571_v4, %v575_v5 }
  0x6d   : > { %1204 = vmatprep.subr.bf16.mxu0 %v1367_v9 }
  0x6e   : > { %1245 = vmatpush3.bf16.msra.mxu1 %v1371_v58 }
  0x6f   : > { %1246 = vmatprep.subr.bf16.mxu1 %v1372_v59 }
  0x70   : > { %1205 = vmatpush3.bf16.msra.mxu0 %v1367_v9 }
  0x71   : > { %1206 = vmatprep.subr.bf16.mxu0 %v1368_v10 }
  0x72   : > { %1247 = vmatpush3.bf16.msra.mxu1 %v1372_v59 }
  0x73   : > { %1248 = vmatprep.subr.bf16.mxu1 %v1373_v60 }
  0x74   : > { %1207 = vmatpush3.bf16.msra.mxu0 %v1368_v10 }
  0x76   : > { %1249 = vmatpush3.bf16.msra.mxu1 %v1373_v60 }
  0x77   : > { %1209 = vmatmul.mubr.bf16.vlgmr.msra.gmra.mxu0 %v312_v15  ;;  %1250 = vmatprep.subr.bf16.mxu1 %v1374_v61 }
  0x78   : > { %1212 = vmatprep.mubr.bf16.mxu0 %v313_v16 }
  0x7a   : > { %1251 = vmatpush3.bf16.msra.mxu1 %v1374_v61 }
  0x7b   : > { %1252 = vmatprep.subr.bf16.mxu1 %v1375_v62 }
  0x7e   : > { %1253 = vmatpush3.bf16.msra.mxu1 %v1375_v62 }
  0x7f   : > { %1213 = vmatmul.mubr.bf16.gmra.mxu0 %v314_v21  ;;  %1254 = vmatprep.subr.bf16.mxu1 %v1376_v63 }
  0x80   : > { %1216 = vmatprep.mubr.bf16.mxu0 %v315_v22 }
  0x82   : > { %1255 = vmatpush3.bf16.msra.mxu1 %v1376_v63 }
  0x87   : > { %1217 = vmatmul.mubr.bf16.gmra.mxu0 %v316_v27 }
  0x88   : > { %1220 = vmatprep.mubr.bf16.mxu0 %v317_v28 }
  0x8f   : > { %1221 = vmatmul.mubr.bf16.gmra.mxu0 %v318_v33 }
  0x90   : > { %1224 = vmatprep.mubr.bf16.mxu0 %v319_v34 }
  0x97   : > { %1225 = vmatmul.mubr.bf16.gmra.mxu0 %v320_v39 }
  0x98   : > { %1228 = vmatprep.mubr.bf16.mxu0 %v321_v40 }
  0x9f   : > { %1229 = vmatmul.mubr.bf16.gmra.mxu0 %v322_v45 }
  0xa0   : > { %1232 = vmatprep.mubr.bf16.mxu0 %v323_v46 }
  0xa7   : > { %1233 = vmatmul.mubr.bf16.gmra.mxu0 %v324_v51 }
  0xa8   : > { %1236 = vmatprep.mubr.bf16.mxu0 %v325_v52 }
  0xaf   : > { %1237 = vmatmul.mubr.bf16.gmra.mxu0 %v326_v55 }
 0x137   : > { %v1210_v6 = vpop.f32.mrf.mxu0 }
 0x139   : > { %v425_v7 = vpop.f32.mrf.mxu0 }
 0x13b   : > { %v1211_v9 = vpop.f32.mrf.mxu0 }
 0x13c   : > { %v553_v10 = vpack.c.bf16 %v1211_v9, %v1210_v6 }
 0x13d   : > { %v428_v11 = vpop.f32.mrf.mxu0 }
 0x13e   : > { %v1780_v12 = vadd.bf16 %v1777_v8, %v553_v10  ;;  %v552_v13 = vpack.c.bf16 %v428_v11, %v425_v7 }
 0x13f   : > { %v1214_v14 = vpop.f32.mrf.mxu0 }
 0x140   : > { %v594_v15 = vmul.bf16 %v1780_v12, %v1780_v12  ;;  %v1785_v16 = vadd.bf16 %v1777_v8, %v552_v13 }
 0x141   : > { %v441_v17 = vpop.f32.mrf.mxu0 }
 0x142   : > { %v610_v18 = vmul.bf16 %v594_v15, %v1780_v12  ;;  %v593_v19 = vmul.bf16 %v1785_v16, %v1785_v16 }
 0x143   : > { %v1215_v20 = vpop.f32.mrf.mxu0 }
 0x144   : > { %v626_v21 = vmul.bf16 1027030327, %v610_v18  ;;  %v555_v22 = vpack.c.bf16 %v1215_v20, %v1214_v14  ;;  %v609_v23 = vmul.bf16 %v593_v19, %v1785_v16 }
 0x145   : > { %v444_v24 = vpop.f32.mrf.mxu0 }
 0x146   : > { %v642_v25 = vadd.bf16 %v626_v21, %v1780_v12  ;;  %v1793_v26 = vadd.bf16 %v1777_v8, %v555_v22  ;;  %v554_v27 = vpack.c.bf16 %v444_v24, %v441_v17  ;;  %v625_v28 = vmul.bf16 1027030327, %v609_v23 }
 0x147   : > { %v1218_v29 = vpop.f32.mrf.mxu0 }
 0x148   : > { %v596_v30 = vmul.bf16 %v1793_v26, %v1793_v26  ;;  %v1798_v31 = vadd.bf16 %v1777_v8, %v554_v27  ;;  %v641_v32 = vadd.bf16 %v625_v28, %v1785_v16  ;;  %v658_v33 = vmul.bf16 1061961548, %v642_v25 }
 0x149   : > { %v457_v34 = vpop.f32.mrf.mxu0 }
 0x14a   : > { %v612_v35 = vmul.bf16 %v596_v30, %v1793_v26  ;;  %v595_v36 = vmul.bf16 %v1798_v31, %v1798_v31  ;;  %v657_v37 = vmul.bf16 1061961548, %v641_v32  ;;  %1377 = vtanh.bf16 %v658_v33 }
 0x14b   : > { %v1219_v38 = vpop.f32.mrf.mxu0 }
 0x14c   : > { %v628_v39 = vmul.bf16 1027030327, %v612_v35  ;;  %v611_v40 = vmul.bf16 %v595_v36, %v1798_v31  ;;  %v557_v41 = vpack.c.bf16 %v1219_v38, %v1218_v29  ;;  %1379 = vtanh.bf16 %v657_v37 }
 0x14d   : > { %v460_v42 = vpop.f32.mrf.mxu0 }
 0x14e   : > { %v644_v43 = vadd.bf16 %v628_v39, %v1793_v26  ;;  %v627_v44 = vmul.bf16 1027030327, %v611_v40  ;;  %v1807_v45 = vadd.bf16 %v1777_v8, %v557_v41  ;;  %v556_v46 = vpack.c.bf16 %v460_v42, %v457_v34 }
 0x14f   : > { %v1222_v47 = vpop.f32.mrf.mxu0 }
 0x150   : > { %v643_v48 = vadd.bf16 %v627_v44, %v1798_v31  ;;  %v598_v49 = vmul.bf16 %v1807_v45, %v1807_v45  ;;  %v1813_v50 = vadd.bf16 %v1777_v8, %v556_v46  ;;  %v660_v51 = vmul.bf16 1061961548, %v644_v43 }
 0x151   : > { %v473_v52 = vpop.f32.mrf.mxu0 }
 0x152   : > { %v614_v53 = vmul.bf16 %v598_v49, %v1807_v45  ;;  %v597_v54 = vmul.bf16 %v1813_v50, %v1813_v50  ;;  %v659_v55 = vmul.bf16 1061961548, %v643_v48  ;;  %1381 = vtanh.bf16 %v660_v51 }
 0x153   : > { %v1223_v56 = vpop.f32.mrf.mxu0 }
 0x154   : > { %v630_v57 = vmul.bf16 1027030327, %v614_v53  ;;  %v613_v58 = vmul.bf16 %v597_v54, %v1813_v50  ;;  %v559_v59 = vpack.c.bf16 %v1223_v56, %v1222_v47  ;;  %1383 = vtanh.bf16 %v659_v55 }
 0x155   : > { %v476_v60 = vpop.f32.mrf.mxu0 }
 0x156   : > { %v646_v61 = vadd.bf16 %v630_v57, %v1807_v45  ;;  %v629_v62 = vmul.bf16 1027030327, %v613_v58  ;;  %v1821_v63 = vadd.bf16 %v1777_v8, %v559_v59  ;;  %v558_v0 = vpack.c.bf16 %v476_v60, %v473_v52 }
 0x157   : > { %v1226_v1 = vpop.f32.mrf.mxu0 }
 0x158   : > { %v1378_v2 = vpop.eup %1377  ;;  %v645_v3 = vadd.bf16 %v629_v62, %v1813_v50  ;;  %v600_v4 = vmul.bf16 %v1821_v63, %v1821_v63  ;;  %v1827_v5 = vadd.bf16 %v1777_v8, %v558_v0  ;;  %v662_v6 = vmul.bf16 1061961548, %v646_v61 }
 0x159   : > { %v489_v7 = vpop.f32.mrf.mxu0  ;;  %v690_v9 = vadd.bf16 1065369472, %v1378_v2 }
 0x15a   : > { %v1380_v10 = vpop.eup %1379  ;;  %v616_v11 = vmul.bf16 %v600_v4, %v1821_v63  ;;  %v599_v13 = vmul.bf16 %v1827_v5, %v1827_v5  ;;  %v661_v14 = vmul.bf16 1061961548, %v645_v3  ;;  %1385 = vtanh.bf16 %v662_v6 }
 0x15b   : > { %v1227_v15 = vpop.f32.mrf.mxu0  ;;  %v689_v17 = vadd.bf16 1065369472, %v1380_v10  ;;  %v706_v18 = vmul.bf16 1056980736, %v690_v9 }
 0x15c   : > { %v632_v19 = vmul.bf16 1027030327, %v616_v11  ;;  %v615_v20 = vmul.bf16 %v599_v13, %v1827_v5  ;;  %v561_v21 = vpack.c.bf16 %v1227_v15, %v1226_v1  ;;  %1387 = vtanh.bf16 %v661_v14 }
 0x15d   : > { %v492_v22 = vpop.f32.mrf.mxu0  ;;  %v705_v23 = vmul.bf16 1056980736, %v689_v17  ;;  %v722_v32 = vmul.bf16 %v706_v18, %v1780_v12 }
 0x15e   : > { %v648_v24 = vadd.bf16 %v632_v19, %v1821_v63  ;;  %v631_v25 = vmul.bf16 1027030327, %v615_v20  ;;  %v1835_v27 = vadd.bf16 %v1777_v8, %v561_v21  ;;  %v560_v28 = vpack.c.bf16 %v492_v22, %v489_v7 }
 0x15f   : > { %v1230_v29 = vpop.f32.mrf.mxu0  ;;  %v721_v30 = vmul.bf16 %v705_v23, %v1785_v16 }
 0x160   : > { %v1382_v33 = vpop.eup %1381  ;;  %v647_v34 = vadd.bf16 %v631_v25, %v1827_v5  ;;  %v602_v35 = vmul.bf16 %v1835_v27, %v1835_v27  ;;  %v1843_v36 = vadd.bf16 %v1777_v8, %v560_v28  ;;  %v664_v37 = vmul.bf16 1061961548, %v648_v24 }
 0x161   : > { %v505_v38 = vpop.f32.mrf.mxu0  ;;  %1256 = vmatprep.mubr.bf16.mxu1 %v721_v30  ;;  %v692_v39 = vadd.bf16 1065369472, %v1382_v33 }
 0x162   : > { %v1384_v40 = vpop.eup %1383  ;;  %v618_v41 = vmul.bf16 %v602_v35, %v1835_v27  ;;  %v601_v16 = vmul.bf16 %v1843_v36, %v1843_v36  ;;  %1257 = vmatmul.mubr.bf16.vlgmr.msra.gmra.mxu1 %v722_v32  ;;  %v663_v12 = vmul.bf16 1061961548, %v647_v34  ;;  %1389 = vtanh.bf16 %v664_v37 }
 0x163   : > { %v1231_v42 = vpop.f32.mrf.mxu0  ;;  %v691_v43 = vadd.bf16 1065369472, %v1384_v40  ;;  %v708_v44 = vmul.bf16 1056980736, %v692_v39 }
 0x164   : > { %v634_v46 = vmul.bf16 1027030327, %v618_v41  ;;  %v617_v47 = vmul.bf16 %v601_v16, %v1843_v36  ;;  %v563_v48 = vpack.c.bf16 %v1231_v42, %v1230_v29  ;;  %1391 = vtanh.bf16 %v663_v12 }
 0x165   : > { %v508_v49 = vpop.f32.mrf.mxu0  ;;  %v707_v51 = vmul.bf16 1056980736, %v691_v43  ;;  %v724_v58 = vmul.bf16 %v708_v44, %v1793_v26 }
 0x166   : > { %v650_v52 = vadd.bf16 %v634_v46, %v1835_v27  ;;  %v633_v53 = vmul.bf16 1027030327, %v617_v47  ;;  %v1851_v54 = vadd.bf16 %v1777_v8, %v563_v48  ;;  %v562_v55 = vpack.c.bf16 %v508_v49, %v505_v38 }
 0x167   : > { %v1234_v56 = vpop.f32.mrf.mxu0  ;;  %v723_v57 = vmul.bf16 %v707_v51, %v1798_v31 }
 0x168   : > { %v1386_v59 = vpop.eup %1385  ;;  %v649_v60 = vadd.bf16 %v633_v53, %v1843_v36  ;;  %v604_v61 = vmul.bf16 %v1851_v54, %v1851_v54  ;;  %v1859_v62 = vadd.bf16 %v1777_v8, %v562_v55  ;;  %v666_v0 = vmul.bf16 1061961548, %v650_v52 }
 0x169   : > { %v521_v1 = vpop.f32.mrf.mxu0  ;;  %1260 = vmatprep.mubr.bf16.mxu1 %v723_v57  ;;  %v694_v2 = vadd.bf16 1065369472, %v1386_v59 }
 0x16a   : > { %v1388_v3 = vpop.eup %1387  ;;  %v620_v4 = vmul.bf16 %v604_v61, %v1851_v54  ;;  %v603_v31 = vmul.bf16 %v1859_v62, %v1859_v62  ;;  %1261 = vmatmul.mubr.bf16.gmra.mxu1 %v724_v58  ;;  %v665_v26 = vmul.bf16 1061961548, %v649_v60  ;;  %1393 = vtanh.bf16 %v666_v0 }
 0x16b   : > { %v1235_v6 = vpop.f32.mrf.mxu0  ;;  %v693_v7 = vadd.bf16 1065369472, %v1388_v3  ;;  %v710_v9 = vmul.bf16 1056980736, %v694_v2 }
 0x16c   : > { %v636_v10 = vmul.bf16 1027030327, %v620_v4  ;;  %v619_v11 = vmul.bf16 %v603_v31, %v1859_v62  ;;  %v565_v13 = vpack.c.bf16 %v1235_v6, %v1234_v56  ;;  %1395 = vtanh.bf16 %v665_v26 }
 0x16d   : > { %v524_v14 = vpop.f32.mrf.mxu0  ;;  %v709_v15 = vmul.bf16 1056980736, %v693_v7  ;;  %v726_v23 = vmul.bf16 %v710_v9, %v1807_v45 }
 0x16e   : > { %v652_v17 = vadd.bf16 %v636_v10, %v1851_v54  ;;  %v635_v18 = vmul.bf16 1027030327, %v619_v11  ;;  %v1867_v19 = vadd.bf16 %v1777_v8, %v565_v13  ;;  %v564_v20 = vpack.c.bf16 %v524_v14, %v521_v1 }
 0x16f   : > { %v1238_v21 = vpop.f32.mrf.mxu0  ;;  %v725_v22 = vmul.bf16 %v709_v15, %v1813_v50 }
 0x170   : > { %v1390_v24 = vpop.eup %1389  ;;  %v651_v25 = vadd.bf16 %v635_v18, %v1859_v62  ;;  %v606_v28 = vmul.bf16 %v1867_v19, %v1867_v19  ;;  %v1875_v29 = vadd.bf16 %v1777_v8, %v564_v20  ;;  %v668_v30 = vmul.bf16 1061961548, %v652_v17 }
 0x171   : > { %v537_v32 = vpop.f32.mrf.mxu0  ;;  %1264 = vmatprep.mubr.bf16.mxu1 %v725_v22  ;;  %v696_v33 = vadd.bf16 1065369472, %v1390_v24 }
 0x172   : > { %v1392_v34 = vpop.eup %1391  ;;  %v622_v35 = vmul.bf16 %v606_v28, %v1867_v19  ;;  %v605_v50 = vmul.bf16 %v1875_v29, %v1875_v29  ;;  %1265 = vmatmul.mubr.bf16.gmra.mxu1 %v726_v23  ;;  %v667_v45 = vmul.bf16 1061961548, %v651_v25  ;;  %1397 = vtanh.bf16 %v668_v30 }
 0x173   : > { %v1239_v37 = vpop.f32.mrf.mxu0  ;;  %v695_v38 = vadd.bf16 1065369472, %v1392_v34  ;;  %v712_v39 = vmul.bf16 1056980736, %v696_v33 }
 0x174   : > { %v638_v40 = vmul.bf16 1027030327, %v622_v35  ;;  %v621_v41 = vmul.bf16 %v605_v50, %v1875_v29  ;;  %v567_v16 = vpack.c.bf16 %v1239_v37, %v1238_v21  ;;  %1399 = vtanh.bf16 %v667_v45 }
 0x175   : > { %v540_v12 = vpop.f32.mrf.mxu0  ;;  %v711_v42 = vmul.bf16 1056980736, %v695_v38  ;;  %v728_v49 = vmul.bf16 %v712_v39, %v1821_v63 }
 0x176   : > { %v654_v43 = vadd.bf16 %v638_v40, %v1867_v19  ;;  %v637_v44 = vmul.bf16 1027030327, %v621_v41  ;;  %v1883_v46 = vadd.bf16 %v1777_v8, %v567_v16  ;;  %v566_v47 = vpack.c.bf16 %v540_v12, %v537_v32 }
 0x177   : > { %v727_v48 = vmul.bf16 %v711_v42, %v1827_v5 }
 0x178   : > { %v1394_v51 = vpop.eup %1393  ;;  %v653_v52 = vadd.bf16 %v637_v44, %v1875_v29  ;;  %v608_v53 = vmul.bf16 %v1883_v46, %v1883_v46  ;;  %v591_v55 = vadd.bf16 %v1777_v8, %v566_v47  ;;  %v670_v56 = vmul.bf16 1061961548, %v654_v43 }
 0x179   : > { %1268 = vmatprep.mubr.bf16.mxu1 %v727_v48  ;;  %v698_v57 = vadd.bf16 1065369472, %v1394_v51 }
 0x17a   : > { %v1396_v58 = vpop.eup %1395  ;;  %v624_v59 = vmul.bf16 %v608_v53, %v1883_v46  ;;  %v607_v60 = vmul.bf16 %v591_v55, %v591_v55  ;;  %1269 = vmatmul.mubr.bf16.gmra.mxu1 %v728_v49  ;;  %v669_v61 = vmul.bf16 1061961548, %v653_v52  ;;  %1401 = vtanh.bf16 %v670_v56 }
 0x17b   : > { %v697_v5 = vadd.bf16 1065369472, %v1396_v58  ;;  %v714_v1 = vmul.bf16 1056980736, %v698_v57 }
 0x17c   : > { %v640_v63 = vmul.bf16 1027030327, %v624_v59  ;;  %v623_v0 = vmul.bf16 %v607_v60, %v591_v55  ;;  %1403 = vtanh.bf16 %v669_v61 }
 0x17d   : > { %v713_v2 = vmul.bf16 1056980736, %v697_v5  ;;  %v730_v6 = vmul.bf16 %v714_v1, %v1835_v27 }
 0x17e   : > { %v656_v3 = vadd.bf16 %v640_v63, %v1883_v46  ;;  %v639_v4 = vmul.bf16 1027030327, %v623_v0 }
 0x17f   : > { %v729_v8 = vmul.bf16 %v713_v2, %v1843_v36 }
 0x180   : > { %v1398_v31 = vpop.eup %1397  ;;  %v655_v26 = vadd.bf16 %v639_v4, %v591_v55  ;;  %v672_v7 = vmul.bf16 1061961548, %v656_v3 }
 0x181   : > { %1272 = vmatprep.mubr.bf16.mxu1 %v729_v8  ;;  %v700_v9 = vadd.bf16 1065369472, %v1398_v31 }
 0x182   : > { %v1400_v10 = vpop.eup %1399  ;;  %1273 = vmatmul.mubr.bf16.gmra.mxu1 %v730_v6  ;;  %v671_v11 = vmul.bf16 1061961548, %v655_v26  ;;  %1405 = vtanh.bf16 %v672_v7 }
 0x183   : > { %v699_v13 = vadd.bf16 1065369472, %v1400_v10  ;;  %v716_v14 = vmul.bf16 1056980736, %v700_v9 }
 0x184   : > { %1407 = vtanh.bf16 %v671_v11 }
 0x185   : > { %v715_v15 = vmul.bf16 1056980736, %v699_v13  ;;  %v732_v36 = vmul.bf16 %v716_v14, %v1851_v54 }
 0x187   : > { %v731_v17 = vmul.bf16 %v715_v15, %v1859_v62 }
 0x188   : > { %v1402_v18 = vpop.eup %1401 }
 0x189   : > { %1276 = vmatprep.mubr.bf16.mxu1 %v731_v17  ;;  %v702_v20 = vadd.bf16 1065369472, %v1402_v18 }
 0x18a   : > { %v1404_v21 = vpop.eup %1403  ;;  %1277 = vmatmul.mubr.bf16.gmra.mxu1 %v732_v36 }
 0x18b   : > { %v701_v27 = vadd.bf16 1065369472, %v1404_v21  ;;  %v718_v22 = vmul.bf16 1056980736, %v702_v20 }
 0x18d   : > { %v717_v23 = vmul.bf16 1056980736, %v701_v27  ;;  %v734_v28 = vmul.bf16 %v718_v22, %v1867_v19 }
 0x18f   : > { %v733_v24 = vmul.bf16 %v717_v23, %v1875_v29  ;;  %v1903_v29 = vld [vmem:[%s2027_s4] ss:$0 sm:$0xff] }
 0x190   : > { %v1406_v25 = vpop.eup %1405 }
 0x191   : > { %1280 = vmatprep.mubr.bf16.mxu1 %v733_v24  ;;  %v704_v30 = vadd.bf16 1065369472, %v1406_v25 }
 0x192   : > { %v1408_v32 = vpop.eup %1407  ;;  %1281 = vmatmul.mubr.bf16.gmra.mxu1 %v734_v28 }
 0x193   : > { %v703_v62 = vadd.bf16 1065369472, %v1408_v32  ;;  %v720_v33 = vmul.bf16 1056980736, %v704_v30 }
 0x195   : > { %v719_v54 = vmul.bf16 1056980736, %v703_v62  ;;  %v736_v35 = vmul.bf16 %v720_v33, %v1883_v46 }
 0x197   : > { %v735_v34 = vmul.bf16 %v719_v54, %v591_v55 }
 0x199   : > { %1284 = vmatprep.mubr.bf16.mxu1 %v735_v34 }
 0x19a   : > { %1285 = vmatmul.mubr.bf16.gmra.mxu1 %v736_v35 }
 0x222   : > { %v1258_v50 = vpop.f32.mrf.mxu1 }
 0x223   : > { %v851_v19 = vadd.f32 %v1258_v50, %v1903_v29 }
 0x224   : > { %v842_v45 = vpop.f32.mrf.mxu1 }
 0x225   : > { %971 = vst [vmem:[%s1908_s11 + $0x10] sm:$0xff] %v851_v19  ;;  %v843_v37 = vadd.f32 %v1903_v29, %v842_v45 }
 0x226   : > { %v1259_v38 = vpop.f32.mrf.mxu1 }
 0x227   : > { %969 = vst [vmem:[%s1908_s11] sm:$0xff] %v843_v37  ;;  %v854_v39 = vadd.f32 %v1259_v38, %v1903_v29 }
 0x228   : > { %v845_v40 = vpop.f32.mrf.mxu1 }
 0x229   : > { %972 = vst [vmem:[%s1908_s11 + $0x18] sm:$0xff] %v854_v39  ;;  %v846_v41 = vadd.f32 %v1903_v29, %v845_v40 }
 0x22a   : > { %v1262_v16 = vpop.f32.mrf.mxu1 }
 0x22b   : > { %970 = vst [vmem:[%s1908_s11 + $0x8] sm:$0xff] %v846_v41  ;;  %v867_v12 = vadd.f32 %v1262_v16, %v1903_v29 }
 0x22c   : > { %v858_v42 = vpop.f32.mrf.mxu1 }
 0x22d   : > { %975 = vst [vmem:[%s1908_s11 + $0x30] sm:$0xff] %v867_v12  ;;  %v859_v43 = vadd.f32 %v1903_v29, %v858_v42 }
 0x22e   : > { %v1263_v44 = vpop.f32.mrf.mxu1 }
 0x22f   : > { %973 = vst [vmem:[%s1908_s11 + $0x20] sm:$0xff] %v859_v43  ;;  %v870_v46 = vadd.f32 %v1263_v44, %v1903_v29 }
 0x230   : > { %v861_v47 = vpop.f32.mrf.mxu1 }
 0x231   : > { %976 = vst [vmem:[%s1908_s11 + $0x38] sm:$0xff] %v870_v46  ;;  %v862_v48 = vadd.f32 %v1903_v29, %v861_v47 }
 0x232   : > { %v1266_v49 = vpop.f32.mrf.mxu1 }
 0x233   : > { %974 = vst [vmem:[%s1908_s11 + $0x28] sm:$0xff] %v862_v48  ;;  %v883_v51 = vadd.f32 %v1266_v49, %v1903_v29 }
 0x234   : > { %v874_v52 = vpop.f32.mrf.mxu1 }
 0x235   : > { %979 = vst [vmem:[%s1908_s11 + $0x50] sm:$0xff] %v883_v51  ;;  %v875_v53 = vadd.f32 %v1903_v29, %v874_v52 }
 0x236   : > { %v1267_v55 = vpop.f32.mrf.mxu1 }
 0x237   : > { %977 = vst [vmem:[%s1908_s11 + $0x40] sm:$0xff] %v875_v53  ;;  %v886_v56 = vadd.f32 %v1267_v55, %v1903_v29 }
 0x238   : > { %v877_v57 = vpop.f32.mrf.mxu1 }
 0x239   : > { %980 = vst [vmem:[%s1908_s11 + $0x58] sm:$0xff] %v886_v56  ;;  %v878_v58 = vadd.f32 %v1903_v29, %v877_v57 }
 0x23a   : > { %v1270_v59 = vpop.f32.mrf.mxu1 }
 0x23b   : > { %978 = vst [vmem:[%s1908_s11 + $0x48] sm:$0xff] %v878_v58  ;;  %v899_v60 = vadd.f32 %v1270_v59, %v1903_v29 }
 0x23c   : > { %v890_v61 = vpop.f32.mrf.mxu1 }
 0x23d   : > { %983 = vst [vmem:[%s1908_s11 + $0x70] sm:$0xff] %v899_v60  ;;  %v891_v5 = vadd.f32 %v1903_v29, %v890_v61 }
 0x23e   : > { %v1271_v63 = vpop.f32.mrf.mxu1 }
 0x23f   : > { %981 = vst [vmem:[%s1908_s11 + $0x60] sm:$0xff] %v891_v5  ;;  %v902_v0 = vadd.f32 %v1271_v63, %v1903_v29 }
 0x240   : > { %v893_v1 = vpop.f32.mrf.mxu1 }
 0x241   : > { %984 = vst [vmem:[%s1908_s11 + $0x78] sm:$0xff] %v902_v0  ;;  %v894_v2 = vadd.f32 %v1903_v29, %v893_v1 }
 0x242   : > { %v1274_v3 = vpop.f32.mrf.mxu1 }
 0x243   : > { %982 = vst [vmem:[%s1908_s11 + $0x68] sm:$0xff] %v894_v2  ;;  %v915_v4 = vadd.f32 %v1274_v3, %v1903_v29 }
 0x244   : > { %v906_v8 = vpop.f32.mrf.mxu1 }
 0x245   : > { %987 = vst [vmem:[%s1908_s11 + $0x90] sm:$0xff] %v915_v4  ;;  %v907_v31 = vadd.f32 %v1903_v29, %v906_v8 }
 0x246   : > { %v1275_v26 = vpop.f32.mrf.mxu1 }
 0x247   : > { %985 = vst [vmem:[%s1908_s11 + $0x80] sm:$0xff] %v907_v31  ;;  %v918_v6 = vadd.f32 %v1275_v26, %v1903_v29 }
 0x248   : > { %v909_v7 = vpop.f32.mrf.mxu1 }
 0x249   : > { %988 = vst [vmem:[%s1908_s11 + $0x98] sm:$0xff] %v918_v6  ;;  %v910_v9 = vadd.f32 %v1903_v29, %v909_v7 }
 0x24a   : > { %v1278_v10 = vpop.f32.mrf.mxu1 }
 0x24b   : > { %986 = vst [vmem:[%s1908_s11 + $0x88] sm:$0xff] %v910_v9  ;;  %v931_v11 = vadd.f32 %v1278_v10, %v1903_v29 }
 0x24c   : > { %v922_v13 = vpop.f32.mrf.mxu1 }
 0x24d   : > { %991 = vst [vmem:[%s1908_s11 + $0xb0] sm:$0xff] %v931_v11  ;;  %v923_v14 = vadd.f32 %v1903_v29, %v922_v13 }
 0x24e   : > { %v1279_v15 = vpop.f32.mrf.mxu1 }
 0x24f   : > { %989 = vst [vmem:[%s1908_s11 + $0xa0] sm:$0xff] %v923_v14  ;;  %v934_v17 = vadd.f32 %v1279_v15, %v1903_v29 }
 0x250   : > { %v925_v18 = vpop.f32.mrf.mxu1 }
 0x251   : > { %992 = vst [vmem:[%s1908_s11 + $0xb8] sm:$0xff] %v934_v17  ;;  %v926_v36 = vadd.f32 %v1903_v29, %v925_v18 }
 0x252   : > { %v1282_v20 = vpop.f32.mrf.mxu1 }
 0x253   : > { %990 = vst [vmem:[%s1908_s11 + $0xa8] sm:$0xff] %v926_v36  ;;  %v947_v21 = vadd.f32 %v1282_v20, %v1903_v29 }
 0x254   : > { %v938_v27 = vpop.f32.mrf.mxu1 }
 0x255   : > { %995 = vst [vmem:[%s1908_s11 + $0xd0] sm:$0xff] %v947_v21  ;;  %v939_v22 = vadd.f32 %v1903_v29, %v938_v27 }
 0x256   : > { %v1283_v23 = vpop.f32.mrf.mxu1 }
 0x257   : > { %993 = vst [vmem:[%s1908_s11 + $0xc0] sm:$0xff] %v939_v22  ;;  %v950_v24 = vadd.f32 %v1283_v23, %v1903_v29 }
 0x258   : > { %v941_v25 = vpop.f32.mrf.mxu1 }
 0x259   : > { %996 = vst [vmem:[%s1908_s11 + $0xd8] sm:$0xff] %v950_v24  ;;  %v942_v28 = vadd.f32 %v1903_v29, %v941_v25 }
 0x25a   : > { %v1286_v30 = vpop.f32.mrf.mxu1 }
 0x25b   : > { %994 = vst [vmem:[%s1908_s11 + $0xc8] sm:$0xff] %v942_v28  ;;  %v963_v32 = vadd.f32 %v1286_v30, %v1903_v29 }
 0x25c   : > { %v954_v62 = vpop.f32.mrf.mxu1 }
 0x25d   : > { %999 = vst [vmem:[%s1908_s11 + $0xf0] sm:$0xff] %v963_v32  ;;  %v955_v33 = vadd.f32 %v1903_v29, %v954_v62 }
 0x25e   : > { %v1287_v54 = vpop.f32.mrf.mxu1 }
 0x25f   : > { %997 = vst [vmem:[%s1908_s11 + $0xe0] sm:$0xff] %v955_v33  ;;  %v966_v34 = vadd.f32 %v1287_v54, %v1903_v29 }
 0x260   : > { %v957_v35 = vpop.f32.mrf.mxu1 }
 0x261   : > { %1000 = vst [vmem:[%s1908_s11 + $0xf8] sm:$0xff] %v966_v34  ;;  %v958_v50 = vadd.f32 %v1903_v29, %v957_v35 }
 0x263   : > { %998 = vst [vmem:[%s1908_s11 + $0xe8] sm:$0xff] %v958_v50 }
 0x264   : > { %1502 = shalt.err (!%p1499_p9)
}
 0x265   : > { %s1503_s30 = scalar_lea.hbm %s1975_s9, 4096  ;;  %s1507_s8 = scalar_lea.hbm %s2028_s5, 8192 }
 0x266   : > { %p1504_p13 = scmp.ne.s32.totalorder %s1975_s9, %s1503_s30  ;;  %p1508_p4 = scmp.lt.s32.totalorder %s1975_s9, %s2028_s5 }
 0x267   : > { %p1509_p8 = scmp.lt.s32.totalorder %s1507_s8, %s1503_s30 }
 0x268   : > { %p1505_p5 = pnand %p1504_p13, %p2044_p10 }
 0x269   : > { %p1510_p3 = por %p1509_p8, %p1508_p4 }
 0x26a   : > { %p1506_p0 = pneg %p1505_p5 }
 0x26c   : > { %p1511_p11 = pnand %p1510_p3, %p1506_p0 }
 0x26e   : > { %1514 = shalt.err (!%p1511_p11)
}
 0x26f   : > { %s1567_s12 = smov 128   ;;  %s1568_s6 = smov 8  }
 0x270   : > { %1298 = dma.vmem_to_hbm [thread:$0]  (%p2044_p10), %s1977_s28, 4096, %s1975_s9, %s1002_s22, %s1567_s12, %s1567_s12, %s1568_s6  }
 0x271 PF: > { %s1030_s7 = sand.u32 1, %s1545_s18   ;;  %p2045_p1 = scmp.ne.s32.totalorder %s2034_s25, 0 }
 0x272   : > { %p2046_p2 = scmp.ge.s32.totalorder %s1557_s21, 2  ;;  %s1031_s13 = scalar_lea.sflag [#allocation4], %s1030_s7 }
 0x274   : > { %p1312_p6 = pnand %p2046_p2, %p2045_p1 }
 0x276   : > { %p1313_p12 = pneg %p1312_p6 }
 0x278   : > { %1540 = dma.done.wait (%p1313_p12), %s1031_s13, 4096  }
 0x279   : > { %1542 = vsyncadd (%p1313_p12), %s1031_s13, 4294963200  ;;  %p19_p7 = scmp.ge.s32.totalorder %s1671_s15, 4   ;;  %s2047_s18 = smov %s1549_s19 }
 0x27a   : > { %s2048_s19 = smov %s1553_s20  ;;  %s2049_s20 = smov %s1687_s27 }
 0x27b   : > { %s2050_s21 = smov %s1671_s15  ;;  %21 = sbr.rel (!%p19_p7) target bundleno = 6 (0x6), region = 93 }
 0x280   :  { %1036 = vsyncpa [#allocation3], 1 }
 0x281   :  { %1038 = vsyncpa [#allocation3 + $0x1], 1 }
 0x282   :  { %1039 = vsyncpa [#allocation6], 1 }
 0x283   :  { %1040 = vsyncpa [#allocation4], 1 }
 0x284   :  { %1042 = vsyncpa [#allocation4 + $0x1], 1 }

// kernel: tpu_custom_call.1
= control target key start
LH: loop header
LB: loop body
LE: loop exit
PB: predicated region body
PF: predicated region fallthrough
CT: control target
= control target key end

     0   :  { %10 = vsyncpa [#allocation3], 0  ;;  %s2023_s0 = inlined_call_operand.hbm [shape: f32[512,128], index: 0, kind: input, shape index: {}]   ;;  %s2024_s1 = inlined_call_operand.hbm [shape: bf16[128,128], index: 1, kind: input, shape index: {}]   ;;  %s2025_s2 = inlined_call_operand.vmem [shape: f32[1,128], index: 2, kind: input, shape index: {}]   ;;  %s2026_s3 = inlined_call_operand.hbm [shape: bf16[128,128], index: 3, kind: input, shape index: {}]   ;;  %s2027_s4 = inlined_call_operand.vmem [shape: f32[1,128], index: 4, kind: input, shape index: {}]   ;;  %s2028_s5 = inlined_call_operand.hbm [shape: f32[512,128], index: 5, kind: output, shape index: {}]  }
   0x1   :  { %12 = vsyncpa [#allocation3 + $0x1], 0 }
   0x2   :  { %13 = vsyncpa [#allocation6], 0 }
   0x3   :  { %14 = vsyncpa [#allocation4], 0 }
   0x4   :  { %16 = vsyncpa [#allocation4 + $0x1], 0  ;;  %s1599_s18 = smov 0   ;;  %s1601_s19 = smov 0  }
   0x5   :  { %s1603_s20 = smov 0   ;;  %s1605_s21 = smov 0  }
   0x6 LB: > { %s1620_s22 = sadd.s32 4294967295, %s1557_s21   ;;  %s1107_s23 = sadd.s32 4294967294, %s1557_s21   ;;  %s1557_s21 = sphi %s1605_s21, %s2050_s21   ;;  %s1553_s20 = sphi %s1603_s20, %s2049_s20   ;;  %s1549_s19 = sphi %s1601_s19, %s2048_s19   ;;  %s1545_s18 = sphi %s1599_s18, %s2047_s18  }
   0x7   : > { %p42_p0 = scmp.ne.s32.totalorder %s1549_s19, %s1545_s18  ;;  %p2029_p1 = scmp.eq.s32.totalorder %s1620_s22, 0 }
   0x8   : > { %p156_p3 = scmp.eq.s32.totalorder %s1107_s23, 1  ;;  %p1108_p5 = scmp.ge.s32.totalorder %s1557_s21, 1 }
   0x9   : > { %p1629_p4 = por %p2029_p1, %p42_p0  ;;  %p163_p7 = scmp.lt.s32.totalorder %s1557_s21, 3 }
   0xa   : > { %p1634_p6 = por %p156_p3, %p42_p0  ;;  %s1559_s27 = smov [#allocation5]  }
   0xb   : > { %s2033_s24 = scalar_select %p1629_p4, 1, 0 }
   0xc   : > { %s2034_s25 = scalar_select %p1634_p6, 1, 0 }
   0xd   : > { %p1639_p8 = pnand %p1108_p5, %p163_p7  ;;  %s175_s28 = sshll.u32 %s1559_s27, 4  ;;  %s176_s28 = int_to_ptr.vmem [resolvable:$true] %s175_s28 }
   0xe   : > { %s1560_s30 = smov [#allocation7]   ;;  %s1420_s7 = scalar_lea.vmem %s176_s28, 1024 }
   0xf   : > { %s2035_s26 = scalar_select %p1639_p8, 1, 0 }
  0x10   : > { %p1300_p9 = pneg %p1639_p8  ;;  %s191_s6 = sshll.u32 %s1560_s30, 4  ;;  %s192_s6 = int_to_ptr.vmem [resolvable:$true] %s191_s6 }
  0x11   : > { %p1421_p13 = scmp.ne.s32.totalorder %s176_s28, %s1420_s7  ;;  %p1428_p5 = scmp.lt.s32.totalorder %s176_s28, %s176_s28 }
  0x12   : > { %p1648_p11 = pnand %p1300_p9, %p2029_p1  ;;  %p1429_p7 = scmp.lt.s32.totalorder %s1420_s7, %s1420_s7 }
  0x14   : > { %p1411_p12 = pneg %p1648_p11  ;;  %p1430_p10 = por %p1429_p7, %p1428_p5 }
  0x16   : > { %p1423_p0 = pnand %p1421_p13, %p1411_p12 }
  0x18   : > { %p1424_p3 = pneg %p1423_p0 }
  0x1a   : > { %p1431_p9 = pnand %p1430_p10, %p1424_p3 }
  0x1c   : > { %1434 = shalt.err (!%p1431_p9)
}
  0x1d   : > { %s1561_s8 = smov 64   ;;  %s1562_s9 = smov 4  }
  0x1e   : > { %1303 = dma.hbm_to_vmem [thread:$0]  (!%p1648_p11), %s2024_s1, 1024, %s176_s28, [#allocation6], %s1561_s8, %s1561_s8, %s1562_s9  }
  0x1f   : > { %s1446_s12 = scalar_lea.vmem %s192_s6, 1024  ;;  %p1454_p2 = scmp.lt.s32.totalorder %s192_s6, %s192_s6 }
  0x20   : > { %p1447_p1 = scmp.ne.s32.totalorder %s192_s6, %s1446_s12  ;;  %p1455_p6 = scmp.lt.s32.totalorder %s1446_s12, %s1446_s12 }
  0x22   : > { %p1449_p13 = pnand %p1447_p1, %p1411_p12  ;;  %p1456_p5 = por %p1455_p6, %p1454_p2 }
  0x24   : > { %p1450_p0 = pneg %p1449_p13 }
  0x26   : > { %p1457_p10 = pnand %p1456_p5, %p1450_p0 }
  0x28   : > { %1460 = shalt.err (!%p1457_p10)
}
  0x29   : > { %1306 = dma.hbm_to_vmem [thread:$0]  (!%p1648_p11), %s2026_s3, 1024, %s192_s6, [#allocation6], %s1561_s8, %s1561_s8, %s1562_s9  }
  0x2a   : > { %s1671_s15 = sadd.s32 1, %s1557_s21   ;;  %s29_s16 = sadd.s32 1, %s1553_s20 }
  0x2b   : > { %s26_s17 = ssub.s32 %s1557_s21, %s1671_s15  ;;  %p36_p1 = scmp.ne.s32.totalorder %s1553_s20, %s1549_s19 }
  0x2c   : > { %p27_p2 = scmp.eq.s32.totalorder %s26_s17, 0  ;;  %p37_p6 = scmp.eq.s32.totalorder %s1557_s21, 0 }
  0x2d   : > { %p2037_p12 = scmp.eq.s32.totalorder %s1620_s22, 1  ;;  %p1317_p7 = scmp.lt.s32.totalorder %s1557_s21, 2 }
  0x2e   : > { %s1687_s27 = scalar_select %p27_p2, %s1553_s20, %s29_s16  }
  0x2f   : > { %p1681_p3 = por %p2037_p12, %p36_p1  ;;  %p38_p9 = por %p37_p6, %p36_p1 }
  0x30   : > { %s208_s28 = sand.u32 1, %s1553_s20   ;;  %s1142_s30 = sshll.u32 %s1557_s21, 12 }
  0x31   : > { %s2038_s23 = scalar_select %p1681_p3, 1, 0 }
  0x32   : > { %s1112_s29 = sshll.u32 %s208_s28, 8  ;;  %s1694_s8 = scalar_lea.hbm %s2023_s0, %s1142_s30 }
  0x33   : > { %s212_s9 = scalar_lea.vmem [#allocation2], %s1112_s29  ;;  %p1698_p11 = pnand %p1317_p7, %p38_p9 }
  0x34   : > { %s219_s10 = sshll.u32 %s212_s9, 4  ;;  %s1702_s12 = scalar_lea.sflag [#allocation3], %s208_s28  ;;  %s1696_s10 = int_to_ptr.vmem [resolvable:$true] %s219_s10 }
  0x35   : > { %s1461_s13 = scalar_lea.hbm %s1694_s8, 4096  ;;  %p1463_p0 = pneg %p1698_p11 }
  0x36   : > { %p1462_p13 = scmp.ne.s32.totalorder %s1694_s8, %s1461_s13  ;;  %s1466_s17 = scalar_lea.hbm %s2023_s0, 8192 }
  0x37   : > { %p1467_p1 = scmp.lt.s32.totalorder %s1694_s8, %s2023_s0  ;;  %p1468_p2 = scmp.lt.s32.totalorder %s1466_s17, %s1461_s13 }
  0x38   : > { %p1464_p5 = pnand %p1463_p0, %p1462_p13 }
  0x39   : > { %p1469_p6 = por %p1468_p2, %p1467_p1 }
  0x3a   : > { %p1465_p10 = pneg %p1464_p5 }
  0x3c   : > { %p1470_p12 = pnand %p1469_p6, %p1465_p10 }
  0x3e   : > { %1473 = shalt.err (!%p1470_p12)
}
  0x3f   : > { %s1474_s28 = scalar_lea.vmem %s1696_s10, 4096  ;;  %s1563_s6 = smov [#allocation2]  }
  0x40   : > { %p1475_p7 = scmp.ne.s32.totalorder %s1696_s10, %s1474_s28  ;;  %s1479_s7 = sshll.u32 %s1563_s6, 4  ;;  %s1480_s7 = int_to_ptr.vmem [resolvable:$false] %s1479_s7 }
  0x41   : > { %s1481_s9 = scalar_lea.vmem %s1480_s7, 8192  ;;  %p1482_p5 = scmp.lt.s32.totalorder %s1696_s10, %s1480_s7 }
  0x42   : > { %p1477_p9 = pnand %p1475_p7, %p1463_p0  ;;  %p1483_p3 = scmp.lt.s32.totalorder %s1481_s9, %s1474_s28 }
  0x44   : > { %p1478_p13 = pneg %p1477_p9  ;;  %p1484_p4 = por %p1483_p3, %p1482_p5 }
  0x46   : > { %p1485_p8 = pnand %p1484_p4, %p1478_p13 }
  0x48   : > { %1488 = shalt.err (!%p1485_p8)
}
  0x49   : > { %s1564_s13 = smov 128   ;;  %s1565_s14 = smov 8  }
  0x4a   : > { %1310 = dma.hbm_to_vmem [thread:$0]  (!%p1698_p11), %s1694_s8, 4096, %s1696_s10, %s1702_s12, %s1564_s13, %s1564_s13, %s1565_s14  }
  0x4b   : > { %p2040_p0 = scmp.ne.s32.totalorder %s2035_s26, 0 }
  0x4c   : > { %s1726_s16 = sand.u32 (!%p2040_p0), 1, %s1549_s19   ;;  %p2041_p4 = scmp.ne.s32.totalorder (!%p2040_p0), %s2033_s24, 0 }
  0x4d   : > { %231 = sbr.rel (%p2040_p0) target bundleno = 625 (0x271), region = 40  ;;  %s1116_s17 = sshll.u32 (!%p2040_p0), %s1726_s16, 8 }
  0x4e   : > { %s234_s29 = scalar_lea.sflag (!%p2040_p0), [#allocation3], %s1726_s16  ;;  %s1732_s30 = scalar_lea.vmem (!%p2040_p0), [#allocation2], %s1116_s17 }
  0x52   : > { %1532 = dma.done.wait (%p2041_p4), %s234_s29, 4096  }
  0x53   : > { %1534 = vsyncadd (%p2041_p4), %s234_s29, 4294963200  ;;  %p2042_p8 = scmp.eq.s32.totalorder %s1620_s22, 0 }
  0x55   : > { %1536 = dma.done.wait (%p2042_p8), [#allocation6], 2048   ;;  %p2043_p3 = pmov %p2042_p8 }
  0x56   : > { %v1361_v0 = vld [vmem:[#allocation5 + $0x38] sm:$0xff]   ;;  %v1362_v1 = vld [vmem:[#allocation5 + $0x30] sm:$0xff]   ;;  %v1363_v2 = vld [vmem:[#allocation5 + $0x28] sm:$0xff]   ;;  %s1908_s11 = scalar_lea.vmem [#allocation8], %s1116_s17  ;;  %s1143_s12 = sshll.u32 %s1620_s22, 12 }
  0x57   : > { %1538 = vsyncadd (%p2043_p3), [#allocation6], 4294965248  ;;  %1192 = vmatprep.subr.bf16.mxu0 %v1361_v0  ;;  %v1364_v3 = vld [vmem:[#allocation5 + $0x20] sm:$0xff]   ;;  %v280_v5 = vld [vmem:[%s1732_s30 + $0x8] sm:$0xff]  ;;  %s1015_s28 = sshll.u32 %s1908_s11, 4  ;;  %s1975_s9 = scalar_lea.hbm %s2028_s5, %s1143_s12  ;;  %s1977_s28 = int_to_ptr.vmem [resolvable:$true] %s1015_s28 }
  0x58   : > { %1193 = vmatpush3.bf16.msra.mxu0 %v1361_v0  ;;  %v279_v4 = vld [vmem:[%s1732_s30] sm:$0xff]  ;;  %v1365_v7 = vld [vmem:[#allocation5 + $0x18] sm:$0xff]   ;;  %v1366_v8 = vld [vmem:[#allocation5 + $0x10] sm:$0xff]   ;;  %v573_v0 = vlaneseq  ;;  %s1002_s22 = scalar_lea.sflag [#allocation4], %s1726_s16  ;;  %s1489_s13 = scalar_lea.vmem %s1977_s28, 4096 }
  0x59   : > { %1194 = vmatprep.subr.bf16.mxu0 %v1362_v1  ;;  %v311_v6 = vpack.c.bf16 %v280_v5, %v279_v4  ;;  %v1367_v9 = vld [vmem:[#allocation5 + $0x8] sm:$0xff]   ;;  %v1368_v10 = vld [vmem:[#allocation5] sm:$0xff]   ;;  %v281_v11 = vld [vmem:[%s1732_s30 + $0x10] sm:$0xff]  ;;  %p1490_p11 = scmp.ne.s32.totalorder %s1977_s28, %s1489_s13  ;;  %p2044_p10 = scmp.ne.s32.totalorder %s2038_s23, 0 }
  0x5a   : > { %v282_v12 = vld [vmem:[%s1732_s30 + $0x18] sm:$0xff]  ;;  %v283_v13 = vld [vmem:[%s1732_s30 + $0x20] sm:$0xff]  ;;  %v284_v14 = vld [vmem:[%s1732_s30 + $0x28] sm:$0xff]  ;;  %s1566_s14 = smov [#allocation8]  }
  0x5b   : > { %1208 = vmatprep.mubr.bf16.mxu0 %v311_v6  ;;  %v312_v15 = vpack.c.bf16 %v282_v12, %v281_v11  ;;  %v313_v16 = vpack.c.bf16 %v284_v14, %v283_v13  ;;  %v285_v17 = vld [vmem:[%s1732_s30 + $0x30] sm:$0xff]  ;;  %v286_v18 = vld [vmem:[%s1732_s30 + $0x38] sm:$0xff]  ;;  %v287_v19 = vld [vmem:[%s1732_s30 + $0x40] sm:$0xff]  ;;  %p1491_p1 = pnand %p1490_p11, %p2044_p10  ;;  %s1493_s17 = sshll.u32 %s1566_s14, 4  ;;  %s1494_s17 = int_to_ptr.vmem [resolvable:$false] %s1493_s17 }
  0x5c   : > { %1195 = vmatpush3.bf16.msra.mxu0 %v1362_v1  ;;  %v288_v20 = vld [vmem:[%s1732_s30 + $0x48] sm:$0xff]  ;;  %v314_v21 = vpack.c.bf16 %v286_v18, %v285_v17  ;;  %v289_v23 = vld [vmem:[%s1732_s30 + $0x50] sm:$0xff]  ;;  %v290_v24 = vld [vmem:[%s1732_s30 + $0x58] sm:$0xff]  ;;  %s1495_s29 = scalar_lea.vmem %s1494_s17, 8192  ;;  %p1496_p6 = scmp.lt.s32.totalorder %s1977_s28, %s1494_s17 }
  0x5d   : > { %1196 = vmatprep.subr.bf16.mxu0 %v1363_v2  ;;  %v315_v22 = vpack.c.bf16 %v288_v20, %v287_v19  ;;  %v291_v25 = vld [vmem:[%s1732_s30 + $0x60] sm:$0xff]  ;;  %v292_v26 = vld [vmem:[%s1732_s30 + $0x68] sm:$0xff]  ;;  %v316_v27 = vpack.c.bf16 %v290_v24, %v289_v23  ;;  %v293_v29 = vld [vmem:[%s1732_s30 + $0x70] sm:$0xff]  ;;  %p1492_p2 = pneg %p1491_p1  ;;  %p1497_p12 = scmp.lt.s32.totalorder %s1495_s29, %s1489_s13 }
  0x5e   : > { %v317_v28 = vpack.c.bf16 %v292_v26, %v291_v25  ;;  %v294_v30 = vld [vmem:[%s1732_s30 + $0x78] sm:$0xff]  ;;  %v295_v31 = vld [vmem:[%s1732_s30 + $0x80] sm:$0xff]  ;;  %v296_v32 = vld [vmem:[%s1732_s30 + $0x88] sm:$0xff] }
  0x5f   : > { %v318_v33 = vpack.c.bf16 %v294_v30, %v293_v29  ;;  %v319_v34 = vpack.c.bf16 %v296_v32, %v295_v31  ;;  %v297_v35 = vld [vmem:[%s1732_s30 + $0x90] sm:$0xff]  ;;  %v298_v36 = vld [vmem:[%s1732_s30 + $0x98] sm:$0xff]  ;;  %v299_v37 = vld [vmem:[%s1732_s30 + $0xa0] sm:$0xff]  ;;  %p1498_p7 = por %p1497_p12, %p1496_p6 }
  0x60   : > { %1197 = vmatpush3.bf16.msra.mxu0 %v1363_v2  ;;  %v300_v38 = vld [vmem:[%s1732_s30 + $0xa8] sm:$0xff]  ;;  %v320_v39 = vpack.c.bf16 %v298_v36, %v297_v35  ;;  %v301_v41 = vld [vmem:[%s1732_s30 + $0xb0] sm:$0xff]  ;;  %v302_v42 = vld [vmem:[%s1732_s30 + $0xb8] sm:$0xff] }
  0x61   : > { %1198 = vmatprep.subr.bf16.mxu0 %v1364_v3  ;;  %v321_v40 = vpack.c.bf16 %v300_v38, %v299_v37  ;;  %v303_v43 = vld [vmem:[%s1732_s30 + $0xc0] sm:$0xff]  ;;  %v304_v44 = vld [vmem:[%s1732_s30 + $0xc8] sm:$0xff]  ;;  %v322_v45 = vpack.c.bf16 %v302_v42, %v301_v41  ;;  %v305_v47 = vld [vmem:[%s1732_s30 + $0xd0] sm:$0xff]  ;;  %p1499_p9 = pnand %p1498_p7, %p1492_p2 }
  0x62   : > { %v323_v46 = vpack.c.bf16 %v304_v44, %v303_v43  ;;  %v306_v48 = vld [vmem:[%s1732_s30 + $0xd8] sm:$0xff]  ;;  %v307_v49 = vld [vmem:[%s1732_s30 + $0xe0] sm:$0xff]  ;;  %v308_v50 = vld [vmem:[%s1732_s30 + $0xe8] sm:$0xff] }
  0x63   : > { %v324_v51 = vpack.c.bf16 %v306_v48, %v305_v47  ;;  %v325_v52 = vpack.c.bf16 %v308_v50, %v307_v49  ;;  %v309_v53 = vld [vmem:[%s1732_s30 + $0xf0] sm:$0xff]  ;;  %v310_v54 = vld [vmem:[%s1732_s30 + $0xf8] sm:$0xff]  ;;  %v1371_v58 = vld [vmem:[#allocation7 + $0x28] sm:$0xff]  }
  0x64   : > { %1199 = vmatpush3.bf16.msra.mxu0 %v1364_v3  ;;  %v326_v55 = vpack.c.bf16 %v310_v54, %v309_v53  ;;  %v1369_v56 = vld [vmem:[#allocation7 + $0x38] sm:$0xff]   ;;  %v1370_v57 = vld [vmem:[#allocation7 + $0x30] sm:$0xff]   ;;  %v1372_v59 = vld [vmem:[#allocation7 + $0x20] sm:$0xff]   ;;  %v574_v3 = vshrl.u32 %v573_v0, 7 }
  0x65   : > { %1200 = vmatprep.subr.bf16.mxu0 %v1365_v7  ;;  %1240 = vmatprep.subr.bf16.mxu1 %v1369_v56  ;;  %v1373_v60 = vld [vmem:[#allocation7 + $0x18] sm:$0xff]   ;;  %v1374_v61 = vld [vmem:[#allocation7 + $0x10] sm:$0xff]   ;;  %v1375_v62 = vld [vmem:[#allocation7 + $0x8] sm:$0xff]  }
  0x66   : > { %1241 = vmatpush3.bf16.msra.mxu1 %v1369_v56  ;;  %v1376_v63 = vld [vmem:[#allocation7] sm:$0xff]   ;;  %v575_v5 = vsub.s32 0, %v574_v3 }
  0x67   : > { %1242 = vmatprep.subr.bf16.mxu1 %v1370_v57  ;;  %v568_v1 = vld [vmem:[%s2025_s2] sm:$0x1] }
  0x68   : > { %1201 = vmatpush3.bf16.msra.mxu0 %v1365_v7  ;;  %v569_v2 = vpack.c.bf16 %v568_v1, %v568_v1 }
  0x69   : > { %1202 = vmatprep.subr.bf16.mxu0 %v1366_v8 }
  0x6a   : > { %1243 = vmatpush3.bf16.msra.mxu1 %v1370_v57  ;;  %v571_v4 = vpack.i.b16 %v569_v2, %v569_v2 }
  0x6b   : > { %1244 = vmatprep.subr.bf16.mxu1 %v1371_v58 }
  0x6c   : > { %1203 = vmatpush3.bf16.msra.mxu0 %v1366_v8  ;;  %v1777_v8 = vrot.slane %v571_v4, %v575_v5 }
  0x6d   : > { %1204 = vmatprep.subr.bf16.mxu0 %v1367_v9 }
  0x6e   : > { %1245 = vmatpush3.bf16.msra.mxu1 %v1371_v58 }
  0x6f   : > { %1246 = vmatprep.subr.bf16.mxu1 %v1372_v59 }
  0x70   : > { %1205 = vmatpush3.bf16.msra.mxu0 %v1367_v9 }
  0x71   : > { %1206 = vmatprep.subr.bf16.mxu0 %v1368_v10 }
  0x72   : > { %1247 = vmatpush3.bf16.msra.mxu1 %v1372_v59 }
  0x73   : > { %1248 = vmatprep.subr.bf16.mxu1 %v1373_v60 }
  0x74   : > { %1207 = vmatpush3.bf16.msra.mxu0 %v1368_v10 }
  0x76   : > { %1249 = vmatpush3.bf16.msra.mxu1 %v1373_v60 }
  0x77   : > { %1209 = vmatmul.mubr.bf16.vlgmr.msra.gmra.mxu0 %v312_v15  ;;  %1250 = vmatprep.subr.bf16.mxu1 %v1374_v61 }
  0x78   : > { %1212 = vmatprep.mubr.bf16.mxu0 %v313_v16 }
  0x7a   : > { %1251 = vmatpush3.bf16.msra.mxu1 %v1374_v61 }
  0x7b   : > { %1252 = vmatprep.subr.bf16.mxu1 %v1375_v62 }
  0x7e   : > { %1253 = vmatpush3.bf16.msra.mxu1 %v1375_v62 }
  0x7f   : > { %1213 = vmatmul.mubr.bf16.gmra.mxu0 %v314_v21  ;;  %1254 = vmatprep.subr.bf16.mxu1 %v1376_v63 }
  0x80   : > { %1216 = vmatprep.mubr.bf16.mxu0 %v315_v22 }
  0x82   : > { %1255 = vmatpush3.bf16.msra.mxu1 %v1376_v63 }
  0x87   : > { %1217 = vmatmul.mubr.bf16.gmra.mxu0 %v316_v27 }
  0x88   : > { %1220 = vmatprep.mubr.bf16.mxu0 %v317_v28 }
  0x8f   : > { %1221 = vmatmul.mubr.bf16.gmra.mxu0 %v318_v33 }
  0x90   : > { %1224 = vmatprep.mubr.bf16.mxu0 %v319_v34 }
  0x97   : > { %1225 = vmatmul.mubr.bf16.gmra.mxu0 %v320_v39 }
  0x98   : > { %1228 = vmatprep.mubr.bf16.mxu0 %v321_v40 }
  0x9f   : > { %1229 = vmatmul.mubr.bf16.gmra.mxu0 %v322_v45 }
  0xa0   : > { %1232 = vmatprep.mubr.bf16.mxu0 %v323_v46 }
  0xa7   : > { %1233 = vmatmul.mubr.bf16.gmra.mxu0 %v324_v51 }
  0xa8   : > { %1236 = vmatprep.mubr.bf16.mxu0 %v325_v52 }
  0xaf   : > { %1237 = vmatmul.mubr.bf16.gmra.mxu0 %v326_v55 }
 0x137   : > { %v1210_v6 = vpop.f32.mrf.mxu0 }
 0x139   : > { %v425_v7 = vpop.f32.mrf.mxu0 }
 0x13b   : > { %v1211_v9 = vpop.f32.mrf.mxu0 }
 0x13c   : > { %v553_v10 = vpack.c.bf16 %v1211_v9, %v1210_v6 }
 0x13d   : > { %v428_v11 = vpop.f32.mrf.mxu0 }
 0x13e   : > { %v1780_v12 = vadd.bf16 %v1777_v8, %v553_v10  ;;  %v552_v13 = vpack.c.bf16 %v428_v11, %v425_v7 }
 0x13f   : > { %v1214_v14 = vpop.f32.mrf.mxu0 }
 0x140   : > { %v594_v15 = vmul.bf16 %v1780_v12, %v1780_v12  ;;  %v1785_v16 = vadd.bf16 %v1777_v8, %v552_v13 }
 0x141   : > { %v441_v17 = vpop.f32.mrf.mxu0 }
 0x142   : > { %v610_v18 = vmul.bf16 %v594_v15, %v1780_v12  ;;  %v593_v19 = vmul.bf16 %v1785_v16, %v1785_v16 }
 0x143   : > { %v1215_v20 = vpop.f32.mrf.mxu0 }
 0x144   : > { %v626_v21 = vmul.bf16 1027030327, %v610_v18  ;;  %v555_v22 = vpack.c.bf16 %v1215_v20, %v1214_v14  ;;  %v609_v23 = vmul.bf16 %v593_v19, %v1785_v16 }
 0x145   : > { %v444_v24 = vpop.f32.mrf.mxu0 }
 0x146   : > { %v642_v25 = vadd.bf16 %v626_v21, %v1780_v12  ;;  %v1793_v26 = vadd.bf16 %v1777_v8, %v555_v22  ;;  %v554_v27 = vpack.c.bf16 %v444_v24, %v441_v17  ;;  %v625_v28 = vmul.bf16 1027030327, %v609_v23 }
 0x147   : > { %v1218_v29 = vpop.f32.mrf.mxu0 }
 0x148   : > { %v596_v30 = vmul.bf16 %v1793_v26, %v1793_v26  ;;  %v1798_v31 = vadd.bf16 %v1777_v8, %v554_v27  ;;  %v641_v32 = vadd.bf16 %v625_v28, %v1785_v16  ;;  %v658_v33 = vmul.bf16 1061961548, %v642_v25 }
 0x149   : > { %v457_v34 = vpop.f32.mrf.mxu0 }
 0x14a   : > { %v612_v35 = vmul.bf16 %v596_v30, %v1793_v26  ;;  %v595_v36 = vmul.bf16 %v1798_v31, %v1798_v31  ;;  %v657_v37 = vmul.bf16 1061961548, %v641_v32  ;;  %1377 = vtanh.bf16 %v658_v33 }
 0x14b   : > { %v1219_v38 = vpop.f32.mrf.mxu0 }
 0x14c   : > { %v628_v39 = vmul.bf16 1027030327, %v612_v35  ;;  %v611_v40 = vmul.bf16 %v595_v36, %v1798_v31  ;;  %v557_v41 = vpack.c.bf16 %v1219_v38, %v1218_v29  ;;  %1379 = vtanh.bf16 %v657_v37 }
 0x14d   : > { %v460_v42 = vpop.f32.mrf.mxu0 }
 0x14e   : > { %v644_v43 = vadd.bf16 %v628_v39, %v1793_v26  ;;  %v627_v44 = vmul.bf16 1027030327, %v611_v40  ;;  %v1807_v45 = vadd.bf16 %v1777_v8, %v557_v41  ;;  %v556_v46 = vpack.c.bf16 %v460_v42, %v457_v34 }
 0x14f   : > { %v1222_v47 = vpop.f32.mrf.mxu0 }
 0x150   : > { %v643_v48 = vadd.bf16 %v627_v44, %v1798_v31  ;;  %v598_v49 = vmul.bf16 %v1807_v45, %v1807_v45  ;;  %v1813_v50 = vadd.bf16 %v1777_v8, %v556_v46  ;;  %v660_v51 = vmul.bf16 1061961548, %v644_v43 }
 0x151   : > { %v473_v52 = vpop.f32.mrf.mxu0 }
 0x152   : > { %v614_v53 = vmul.bf16 %v598_v49, %v1807_v45  ;;  %v597_v54 = vmul.bf16 %v1813_v50, %v1813_v50  ;;  %v659_v55 = vmul.bf16 1061961548, %v643_v48  ;;  %1381 = vtanh.bf16 %v660_v51 }
 0x153   : > { %v1223_v56 = vpop.f32.mrf.mxu0 }
 0x154   : > { %v630_v57 = vmul.bf16 1027030327, %v614_v53  ;;  %v613_v58 = vmul.bf16 %v597_v54, %v1813_v50  ;;  %v559_v59 = vpack.c.bf16 %v1223_v56, %v1222_v47  ;;  %1383 = vtanh.bf16 %v659_v55 }
 0x155   : > { %v476_v60 = vpop.f32.mrf.mxu0 }
 0x156   : > { %v646_v61 = vadd.bf16 %v630_v57, %v1807_v45  ;;  %v629_v62 = vmul.bf16 1027030327, %v613_v58  ;;  %v1821_v63 = vadd.bf16 %v1777_v8, %v559_v59  ;;  %v558_v0 = vpack.c.bf16 %v476_v60, %v473_v52 }
 0x157   : > { %v1226_v1 = vpop.f32.mrf.mxu0 }
 0x158   : > { %v1378_v2 = vpop.eup %1377  ;;  %v645_v3 = vadd.bf16 %v629_v62, %v1813_v50  ;;  %v600_v4 = vmul.bf16 %v1821_v63, %v1821_v63  ;;  %v1827_v5 = vadd.bf16 %v1777_v8, %v558_v0  ;;  %v662_v6 = vmul.bf16 1061961548, %v646_v61 }
 0x159   : > { %v489_v7 = vpop.f32.mrf.mxu0  ;;  %v690_v9 = vadd.bf16 1065369472, %v1378_v2 }
 0x15a   : > { %v1380_v10 = vpop.eup %1379  ;;  %v616_v11 = vmul.bf16 %v600_v4, %v1821_v63  ;;  %v599_v13 = vmul.bf16 %v1827_v5, %v1827_v5  ;;  %v661_v14 = vmul.bf16 1061961548, %v645_v3  ;;  %1385 = vtanh.bf16 %v662_v6 }
 0x15b   : > { %v1227_v15 = vpop.f32.mrf.mxu0  ;;  %v689_v17 = vadd.bf16 1065369472, %v1380_v10  ;;  %v706_v18 = vmul.bf16 1056980736, %v690_v9 }
 0x15c   : > { %v632_v19 = vmul.bf16 1027030327, %v616_v11  ;;  %v615_v20 = vmul.bf16 %v599_v13, %v1827_v5  ;;  %v561_v21 = vpack.c.bf16 %v1227_v15, %v1226_v1  ;;  %1387 = vtanh.bf16 %v661_v14 }
 0x15d   : > { %v492_v22 = vpop.f32.mrf.mxu0  ;;  %v705_v23 = vmul.bf16 1056980736, %v689_v17  ;;  %v722_v32 = vmul.bf16 %v706_v18, %v1780_v12 }
 0x15e   : > { %v648_v24 = vadd.bf16 %v632_v19, %v1821_v63  ;;  %v631_v25 = vmul.bf16 1027030327, %v615_v20  ;;  %v1835_v27 = vadd.bf16 %v1777_v8, %v561_v21  ;;  %v560_v28 = vpack.c.bf16 %v492_v22, %v489_v7 }
 0x15f   : > { %v1230_v29 = vpop.f32.mrf.mxu0  ;;  %v721_v30 = vmul.bf16 %v705_v23, %v1785_v16 }
 0x160   : > { %v1382_v33 = vpop.eup %1381  ;;  %v647_v34 = vadd.bf16 %v631_v25, %v1827_v5  ;;  %v602_v35 = vmul.bf16 %v1835_v27, %v1835_v27  ;;  %v1843_v36 = vadd.bf16 %v1777_v8, %v560_v28  ;;  %v664_v37 = vmul.bf16 1061961548, %v648_v24 }
 0x161   : > { %v505_v38 = vpop.f32.mrf.mxu0  ;;  %1256 = vmatprep.mubr.bf16.mxu1 %v721_v30  ;;  %v692_v39 = vadd.bf16 1065369472, %v1382_v33 }
 0x162   : > { %v1384_v40 = vpop.eup %1383  ;;  %v618_v41 = vmul.bf16 %v602_v35, %v1835_v27  ;;  %v601_v16 = vmul.bf16 %v1843_v36, %v1843_v36  ;;  %1257 = vmatmul.mubr.bf16.vlgmr.msra.gmra.mxu1 %v722_v32  ;;  %v663_v12 = vmul.bf16 1061961548, %v647_v34  ;;  %1389 = vtanh.bf16 %v664_v37 }
 0x163   : > { %v1231_v42 = vpop.f32.mrf.mxu0  ;;  %v691_v43 = vadd.bf16 1065369472, %v1384_v40  ;;  %v708_v44 = vmul.bf16 1056980736, %v692_v39 }
 0x164   : > { %v634_v46 = vmul.bf16 1027030327, %v618_v41  ;;  %v617_v47 = vmul.bf16 %v601_v16, %v1843_v36  ;;  %v563_v48 = vpack.c.bf16 %v1231_v42, %v1230_v29  ;;  %1391 = vtanh.bf16 %v663_v12 }
 0x165   : > { %v508_v49 = vpop.f32.mrf.mxu0  ;;  %v707_v51 = vmul.bf16 1056980736, %v691_v43  ;;  %v724_v58 = vmul.bf16 %v708_v44, %v1793_v26 }
 0x166   : > { %v650_v52 = vadd.bf16 %v634_v46, %v1835_v27  ;;  %v633_v53 = vmul.bf16 1027030327, %v617_v47  ;;  %v1851_v54 = vadd.bf16 %v1777_v8, %v563_v48  ;;  %v562_v55 = vpack.c.bf16 %v508_v49, %v505_v38 }
 0x167   : > { %v1234_v56 = vpop.f32.mrf.mxu0  ;;  %v723_v57 = vmul.bf16 %v707_v51, %v1798_v31 }
 0x168   : > { %v1386_v59 = vpop.eup %1385  ;;  %v649_v60 = vadd.bf16 %v633_v53, %v1843_v36  ;;  %v604_v61 = vmul.bf16 %v1851_v54, %v1851_v54  ;;  %v1859_v62 = vadd.bf16 %v1777_v8, %v562_v55  ;;  %v666_v0 = vmul.bf16 1061961548, %v650_v52 }
 0x169   : > { %v521_v1 = vpop.f32.mrf.mxu0  ;;  %1260 = vmatprep.mubr.bf16.mxu1 %v723_v57  ;;  %v694_v2 = vadd.bf16 1065369472, %v1386_v59 }
 0x16a   : > { %v1388_v3 = vpop.eup %1387  ;;  %v620_v4 = vmul.bf16 %v604_v61, %v1851_v54  ;;  %v603_v31 = vmul.bf16 %v1859_v62, %v1859_v62  ;;  %1261 = vmatmul.mubr.bf16.gmra.mxu1 %v724_v58  ;;  %v665_v26 = vmul.bf16 1061961548, %v649_v60  ;;  %1393 = vtanh.bf16 %v666_v0 }
 0x16b   : > { %v1235_v6 = vpop.f32.mrf.mxu0  ;;  %v693_v7 = vadd.bf16 1065369472, %v1388_v3  ;;  %v710_v9 = vmul.bf16 1056980736, %v694_v2 }
 0x16c   : > { %v636_v10 = vmul.bf16 1027030327, %v620_v4  ;;  %v619_v11 = vmul.bf16 %v603_v31, %v1859_v62  ;;  %v565_v13 = vpack.c.bf16 %v1235_v6, %v1234_v56  ;;  %1395 = vtanh.bf16 %v665_v26 }
 0x16d   : > { %v524_v14 = vpop.f32.mrf.mxu0  ;;  %v709_v15 = vmul.bf16 1056980736, %v693_v7  ;;  %v726_v23 = vmul.bf16 %v710_v9, %v1807_v45 }
 0x16e   : > { %v652_v17 = vadd.bf16 %v636_v10, %v1851_v54  ;;  %v635_v18 = vmul.bf16 1027030327, %v619_v11  ;;  %v1867_v19 = vadd.bf16 %v1777_v8, %v565_v13  ;;  %v564_v20 = vpack.c.bf16 %v524_v14, %v521_v1 }
 0x16f   : > { %v1238_v21 = vpop.f32.mrf.mxu0  ;;  %v725_v22 = vmul.bf16 %v709_v15, %v1813_v50 }
 0x170   : > { %v1390_v24 = vpop.eup %1389  ;;  %v651_v25 = vadd.bf16 %v635_v18, %v1859_v62  ;;  %v606_v28 = vmul.bf16 %v1867_v19, %v1867_v19  ;;  %v1875_v29 = vadd.bf16 %v1777_v8, %v564_v20  ;;  %v668_v30 = vmul.bf16 1061961548, %v652_v17 }
 0x171   : > { %v537_v32 = vpop.f32.mrf.mxu0  ;;  %1264 = vmatprep.mubr.bf16.mxu1 %v725_v22  ;;  %v696_v33 = vadd.bf16 1065369472, %v1390_v24 }
 0x172   : > { %v1392_v34 = vpop.eup %1391  ;;  %v622_v35 = vmul.bf16 %v606_v28, %v1867_v19  ;;  %v605_v50 = vmul.bf16 %v1875_v29, %v1875_v29  ;;  %1265 = vmatmul.mubr.bf16.gmra.mxu1 %v726_v23  ;;  %v667_v45 = vmul.bf16 1061961548, %v651_v25  ;;  %1397 = vtanh.bf16 %v668_v30 }
 0x173   : > { %v1239_v37 = vpop.f32.mrf.mxu0  ;;  %v695_v38 = vadd.bf16 1065369472, %v1392_v34  ;;  %v712_v39 = vmul.bf16 1056980736, %v696_v33 }
 0x174   : > { %v638_v40 = vmul.bf16 1027030327, %v622_v35  ;;  %v621_v41 = vmul.bf16 %v605_v50, %v1875_v29  ;;  %v567_v16 = vpack.c.bf16 %v1239_v37, %v1238_v21  ;;  %1399 = vtanh.bf16 %v667_v45 }
 0x175   : > { %v540_v12 = vpop.f32.mrf.mxu0  ;;  %v711_v42 = vmul.bf16 1056980736, %v695_v38  ;;  %v728_v49 = vmul.bf16 %v712_v39, %v1821_v63 }
 0x176   : > { %v654_v43 = vadd.bf16 %v638_v40, %v1867_v19  ;;  %v637_v44 = vmul.bf16 1027030327, %v621_v41  ;;  %v1883_v46 = vadd.bf16 %v1777_v8, %v567_v16  ;;  %v566_v47 = vpack.c.bf16 %v540_v12, %v537_v32 }
 0x177   : > { %v727_v48 = vmul.bf16 %v711_v42, %v1827_v5 }
 0x178   : > { %v1394_v51 = vpop.eup %1393  ;;  %v653_v52 = vadd.bf16 %v637_v44, %v1875_v29  ;;  %v608_v53 = vmul.bf16 %v1883_v46, %v1883_v46  ;;  %v591_v55 = vadd.bf16 %v1777_v8, %v566_v47  ;;  %v670_v56 = vmul.bf16 1061961548, %v654_v43 }
 0x179   : > { %1268 = vmatprep.mubr.bf16.mxu1 %v727_v48  ;;  %v698_v57 = vadd.bf16 1065369472, %v1394_v51 }
 0x17a   : > { %v1396_v58 = vpop.eup %1395  ;;  %v624_v59 = vmul.bf16 %v608_v53, %v1883_v46  ;;  %v607_v60 = vmul.bf16 %v591_v55, %v591_v55  ;;  %1269 = vmatmul.mubr.bf16.gmra.mxu1 %v728_v49  ;;  %v669_v61 = vmul.bf16 1061961548, %v653_v52  ;;  %1401 = vtanh.bf16 %v670_v56 }
 0x17b   : > { %v697_v5 = vadd.bf16 1065369472, %v1396_v58  ;;  %v714_v1 = vmul.bf16 1056980736, %v698_v57 }
 0x17c   : > { %v640_v63 = vmul.bf16 1027030327, %v624_v59  ;;  %v623_v0 = vmul.bf16 %v607_v60, %v591_v55  ;;  %1403 = vtanh.bf16 %v669_v61 }
 0x17d   : > { %v713_v2 = vmul.bf16 1056980736, %v697_v5  ;;  %v730_v6 = vmul.bf16 %v714_v1, %v1835_v27 }
 0x17e   : > { %v656_v3 = vadd.bf16 %v640_v63, %v1883_v46  ;;  %v639_v4 = vmul.bf16 1027030327, %v623_v0 }
 0x17f   : > { %v729_v8 = vmul.bf16 %v713_v2, %v1843_v36 }
 0x180   : > { %v1398_v31 = vpop.eup %1397  ;;  %v655_v26 = vadd.bf16 %v639_v4, %v591_v55  ;;  %v672_v7 = vmul.bf16 1061961548, %v656_v3 }
 0x181   : > { %1272 = vmatprep.mubr.bf16.mxu1 %v729_v8  ;;  %v700_v9 = vadd.bf16 1065369472, %v1398_v31 }
 0x182   : > { %v1400_v10 = vpop.eup %1399  ;;  %1273 = vmatmul.mubr.bf16.gmra.mxu1 %v730_v6  ;;  %v671_v11 = vmul.bf16 1061961548, %v655_v26  ;;  %1405 = vtanh.bf16 %v672_v7 }
 0x183   : > { %v699_v13 = vadd.bf16 1065369472, %v1400_v10  ;;  %v716_v14 = vmul.bf16 1056980736, %v700_v9 }
 0x184   : > { %1407 = vtanh.bf16 %v671_v11 }
 0x185   : > { %v715_v15 = vmul.bf16 1056980736, %v699_v13  ;;  %v732_v36 = vmul.bf16 %v716_v14, %v1851_v54 }
 0x187   : > { %v731_v17 = vmul.bf16 %v715_v15, %v1859_v62 }
 0x188   : > { %v1402_v18 = vpop.eup %1401 }
 0x189   : > { %1276 = vmatprep.mubr.bf16.mxu1 %v731_v17  ;;  %v702_v20 = vadd.bf16 1065369472, %v1402_v18 }
 0x18a   : > { %v1404_v21 = vpop.eup %1403  ;;  %1277 = vmatmul.mubr.bf16.gmra.mxu1 %v732_v36 }
 0x18b   : > { %v701_v27 = vadd.bf16 1065369472, %v1404_v21  ;;  %v718_v22 = vmul.bf16 1056980736, %v702_v20 }
 0x18d   : > { %v717_v23 = vmul.bf16 1056980736, %v701_v27  ;;  %v734_v28 = vmul.bf16 %v718_v22, %v1867_v19 }
 0x18f   : > { %v733_v24 = vmul.bf16 %v717_v23, %v1875_v29  ;;  %v1903_v29 = vld [vmem:[%s2027_s4] ss:$0 sm:$0xff] }
 0x190   : > { %v1406_v25 = vpop.eup %1405 }
 0x191   : > { %1280 = vmatprep.mubr.bf16.mxu1 %v733_v24  ;;  %v704_v30 = vadd.bf16 1065369472, %v1406_v25 }
 0x192   : > { %v1408_v32 = vpop.eup %1407  ;;  %1281 = vmatmul.mubr.bf16.gmra.mxu1 %v734_v28 }
 0x193   : > { %v703_v62 = vadd.bf16 1065369472, %v1408_v32  ;;  %v720_v33 = vmul.bf16 1056980736, %v704_v30 }
 0x195   : > { %v719_v54 = vmul.bf16 1056980736, %v703_v62  ;;  %v736_v35 = vmul.bf16 %v720_v33, %v1883_v46 }
 0x197   : > { %v735_v34 = vmul.bf16 %v719_v54, %v591_v55 }
 0x199   : > { %1284 = vmatprep.mubr.bf16.mxu1 %v735_v34 }
 0x19a   : > { %1285 = vmatmul.mubr.bf16.gmra.mxu1 %v736_v35 }
 0x222   : > { %v1258_v50 = vpop.f32.mrf.mxu1 }
 0x223   : > { %v851_v19 = vadd.f32 %v1258_v50, %v1903_v29 }
 0x224   : > { %v842_v45 = vpop.f32.mrf.mxu1 }
 0x225   : > { %971 = vst [vmem:[%s1908_s11 + $0x10] sm:$0xff] %v851_v19  ;;  %v843_v37 = vadd.f32 %v1903_v29, %v842_v45 }
 0x226   : > { %v1259_v38 = vpop.f32.mrf.mxu1 }
 0x227   : > { %969 = vst [vmem:[%s1908_s11] sm:$0xff] %v843_v37  ;;  %v854_v39 = vadd.f32 %v1259_v38, %v1903_v29 }
 0x228   : > { %v845_v40 = vpop.f32.mrf.mxu1 }
 0x229   : > { %972 = vst [vmem:[%s1908_s11 + $0x18] sm:$0xff] %v854_v39  ;;  %v846_v41 = vadd.f32 %v1903_v29, %v845_v40 }
 0x22a   : > { %v1262_v16 = vpop.f32.mrf.mxu1 }
 0x22b   : > { %970 = vst [vmem:[%s1908_s11 + $0x8] sm:$0xff] %v846_v41  ;;  %v867_v12 = vadd.f32 %v1262_v16, %v1903_v29 }
 0x22c   : > { %v858_v42 = vpop.f32.mrf.mxu1 }
 0x22d   : > { %975 = vst [vmem:[%s1908_s11 + $0x30] sm:$0xff] %v867_v12  ;;  %v859_v43 = vadd.f32 %v1903_v29, %v858_v42 }
 0x22e   : > { %v1263_v44 = vpop.f32.mrf.mxu1 }
 0x22f   : > { %973 = vst [vmem:[%s1908_s11 + $0x20] sm:$0xff] %v859_v43  ;;  %v870_v46 = vadd.f32 %v1263_v44, %v1903_v29 }
 0x230   : > { %v861_v47 = vpop.f32.mrf.mxu1 }
 0x231   : > { %976 = vst [vmem:[%s1908_s11 + $0x38] sm:$0xff] %v870_v46  ;;  %v862_v48 = vadd.f32 %v1903_v29, %v861_v47 }
 0x232   : > { %v1266_v49 = vpop.f32.mrf.mxu1 }
 0x233   : > { %974 = vst [vmem:[%s1908_s11 + $0x28] sm:$0xff] %v862_v48  ;;  %v883_v51 = vadd.f32 %v1266_v49, %v1903_v29 }
 0x234   : > { %v874_v52 = vpop.f32.mrf.mxu1 }
 0x235   : > { %979 = vst [vmem:[%s1908_s11 + $0x50] sm:$0xff] %v883_v51  ;;  %v875_v53 = vadd.f32 %v1903_v29, %v874_v52 }
 0x236   : > { %v1267_v55 = vpop.f32.mrf.mxu1 }
 0x237   : > { %977 = vst [vmem:[%s1908_s11 + $0x40] sm:$0xff] %v875_v53  ;;  %v886_v56 = vadd.f32 %v1267_v55, %v1903_v29 }
 0x238   : > { %v877_v57 = vpop.f32.mrf.mxu1 }
 0x239   : > { %980 = vst [vmem:[%s1908_s11 + $0x58] sm:$0xff] %v886_v56  ;;  %v878_v58 = vadd.f32 %v1903_v29, %v877_v57 }
 0x23a   : > { %v1270_v59 = vpop.f32.mrf.mxu1 }
 0x23b   : > { %978 = vst [vmem:[%s1908_s11 + $0x48] sm:$0xff] %v878_v58  ;;  %v899_v60 = vadd.f32 %v1270_v59, %v1903_v29 }
 0x23c   : > { %v890_v61 = vpop.f32.mrf.mxu1 }
 0x23d   : > { %983 = vst [vmem:[%s1908_s11 + $0x70] sm:$0xff] %v899_v60  ;;  %v891_v5 = vadd.f32 %v1903_v29, %v890_v61 }
 0x23e   : > { %v1271_v63 = vpop.f32.mrf.mxu1 }
 0x23f   : > { %981 = vst [vmem:[%s1908_s11 + $0x60] sm:$0xff] %v891_v5  ;;  %v902_v0 = vadd.f32 %v1271_v63, %v1903_v29 }
 0x240   : > { %v893_v1 = vpop.f32.mrf.mxu1 }
 0x241   : > { %984 = vst [vmem:[%s1908_s11 + $0x78] sm:$0xff] %v902_v0  ;;  %v894_v2 = vadd.f32 %v1903_v29, %v893_v1 }
 0x242   : > { %v1274_v3 = vpop.f32.mrf.mxu1 }
 0x243   : > { %982 = vst [vmem:[%s1908_s11 + $0x68] sm:$0xff] %v894_v2  ;;  %v915_v4 = vadd.f32 %v1274_v3, %v1903_v29 }
 0x244   : > { %v906_v8 = vpop.f32.mrf.mxu1 }
 0x245   : > { %987 = vst [vmem:[%s1908_s11 + $0x90] sm:$0xff] %v915_v4  ;;  %v907_v31 = vadd.f32 %v1903_v29, %v906_v8 }
 0x246   : > { %v1275_v26 = vpop.f32.mrf.mxu1 }
 0x247   : > { %985 = vst [vmem:[%s1908_s11 + $0x80] sm:$0xff] %v907_v31  ;;  %v918_v6 = vadd.f32 %v1275_v26, %v1903_v29 }
 0x248   : > { %v909_v7 = vpop.f32.mrf.mxu1 }
 0x249   : > { %988 = vst [vmem:[%s1908_s11 + $0x98] sm:$0xff] %v918_v6  ;;  %v910_v9 = vadd.f32 %v1903_v29, %v909_v7 }
 0x24a   : > { %v1278_v10 = vpop.f32.mrf.mxu1 }
 0x24b   : > { %986 = vst [vmem:[%s1908_s11 + $0x88] sm:$0xff] %v910_v9  ;;  %v931_v11 = vadd.f32 %v1278_v10, %v1903_v29 }
 0x24c   : > { %v922_v13 = vpop.f32.mrf.mxu1 }
 0x24d   : > { %991 = vst [vmem:[%s1908_s11 + $0xb0] sm:$0xff] %v931_v11  ;;  %v923_v14 = vadd.f32 %v1903_v29, %v922_v13 }
 0x24e   : > { %v1279_v15 = vpop.f32.mrf.mxu1 }
 0x24f   : > { %989 = vst [vmem:[%s1908_s11 + $0xa0] sm:$0xff] %v923_v14  ;;  %v934_v17 = vadd.f32 %v1279_v15, %v1903_v29 }
 0x250   : > { %v925_v18 = vpop.f32.mrf.mxu1 }
 0x251   : > { %992 = vst [vmem:[%s1908_s11 + $0xb8] sm:$0xff] %v934_v17  ;;  %v926_v36 = vadd.f32 %v1903_v29, %v925_v18 }
 0x252   : > { %v1282_v20 = vpop.f32.mrf.mxu1 }
 0x253   : > { %990 = vst [vmem:[%s1908_s11 + $0xa8] sm:$0xff] %v926_v36  ;;  %v947_v21 = vadd.f32 %v1282_v20, %v1903_v29 }
 0x254   : > { %v938_v27 = vpop.f32.mrf.mxu1 }
 0x255   : > { %995 = vst [vmem:[%s1908_s11 + $0xd0] sm:$0xff] %v947_v21  ;;  %v939_v22 = vadd.f32 %v1903_v29, %v938_v27 }
 0x256   : > { %v1283_v23 = vpop.f32.mrf.mxu1 }
 0x257   : > { %993 = vst [vmem:[%s1908_s11 + $0xc0] sm:$0xff] %v939_v22  ;;  %v950_v24 = vadd.f32 %v1283_v23, %v1903_v29 }
 0x258   : > { %v941_v25 = vpop.f32.mrf.mxu1 }
 0x259   : > { %996 = vst [vmem:[%s1908_s11 + $0xd8] sm:$0xff] %v950_v24  ;;  %v942_v28 = vadd.f32 %v1903_v29, %v941_v25 }
 0x25a   : > { %v1286_v30 = vpop.f32.mrf.mxu1 }
 0x25b   : > { %994 = vst [vmem:[%s1908_s11 + $0xc8] sm:$0xff] %v942_v28  ;;  %v963_v32 = vadd.f32 %v1286_v30, %v1903_v29 }
 0x25c   : > { %v954_v62 = vpop.f32.mrf.mxu1 }
 0x25d   : > { %999 = vst [vmem:[%s1908_s11 + $0xf0] sm:$0xff] %v963_v32  ;;  %v955_v33 = vadd.f32 %v1903_v29, %v954_v62 }
 0x25e   : > { %v1287_v54 = vpop.f32.mrf.mxu1 }
 0x25f   : > { %997 = vst [vmem:[%s1908_s11 + $0xe0] sm:$0xff] %v955_v33  ;;  %v966_v34 = vadd.f32 %v1287_v54, %v1903_v29 }
 0x260   : > { %v957_v35 = vpop.f32.mrf.mxu1 }
 0x261   : > { %1000 = vst [vmem:[%s1908_s11 + $0xf8] sm:$0xff] %v966_v34  ;;  %v958_v50 = vadd.f32 %v1903_v29, %v957_v35 }
 0x263   : > { %998 = vst [vmem:[%s1908_s11 + $0xe8] sm:$0xff] %v958_v50 }
 0x264   : > { %1502 = shalt.err (!%p1499_p9)
}
 0x265   : > { %s1503_s30 = scalar_lea.hbm %s1975_s9, 4096  ;;  %s1507_s8 = scalar_lea.hbm %s2028_s5, 8192 }
 0x266   : > { %p1504_p13 = scmp.ne.s32.totalorder %s1975_s9, %s1503_s30  ;;  %p1508_p4 = scmp.lt.s32.totalorder %s1975_s9, %s2028_s5 }
 0x267   : > { %p1509_p8 = scmp.lt.s32.totalorder %s1507_s8, %s1503_s30 }
 0x268   : > { %p1505_p5 = pnand %p1504_p13, %p2044_p10 }
 0x269   : > { %p1510_p3 = por %p1509_p8, %p1508_p4 }
 0x26a   : > { %p1506_p0 = pneg %p1505_p5 }
 0x26c   : > { %p1511_p11 = pnand %p1510_p3, %p1506_p0 }
 0x26e   : > { %1514 = shalt.err (!%p1511_p11)
}
 0x26f   : > { %s1567_s12 = smov 128   ;;  %s1568_s6 = smov 8  }
 0x270   : > { %1298 = dma.vmem_to_hbm [thread:$0]  (%p2044_p10), %s1977_s28, 4096, %s1975_s9, %s1002_s22, %s1567_s12, %s1567_s12, %s1568_s6  }
 0x271 PF: > { %s1030_s7 = sand.u32 1, %s1545_s18   ;;  %p2045_p1 = scmp.ne.s32.totalorder %s2034_s25, 0 }
 0x272   : > { %p2046_p2 = scmp.ge.s32.totalorder %s1557_s21, 2  ;;  %s1031_s13 = scalar_lea.sflag [#allocation4], %s1030_s7 }
 0x274   : > { %p1312_p6 = pnand %p2046_p2, %p2045_p1 }
 0x276   : > { %p1313_p12 = pneg %p1312_p6 }
 0x278   : > { %1540 = dma.done.wait (%p1313_p12), %s1031_s13, 4096  }
 0x279   : > { %1542 = vsyncadd (%p1313_p12), %s1031_s13, 4294963200  ;;  %p19_p7 = scmp.ge.s32.totalorder %s1671_s15, 4   ;;  %s2047_s18 = smov %s1549_s19 }
 0x27a   : > { %s2048_s19 = smov %s1553_s20  ;;  %s2049_s20 = smov %s1687_s27 }
 0x27b   : > { %s2050_s21 = smov %s1671_s15  ;;  %21 = sbr.rel (!%p19_p7) target bundleno = 6 (0x6), region = 93 }
 0x280   :  { %1036 = vsyncpa [#allocation3], 1 }
 0x281   :  { %1038 = vsyncpa [#allocation3 + $0x1], 1 }
 0x282   :  { %1039 = vsyncpa [#allocation6], 1 }
 0x283   :  { %1040 = vsyncpa [#allocation4], 1 }
 0x284   :  { %1042 = vsyncpa [#allocation4 + $0x1], 1 }

</bundles_post_ra>
